<compile_context>
chip_gen: v6e
topology: v6e:2x2x1
jax: 0.10.0
libtpu: 0.0.40
codegen_flags: <defaults>
</compile_context>

<pallas_src>
import math

import jax
import jax.numpy as jnp
from jax.experimental import pallas as pl
from jax.experimental.pallas import tpu as pltpu

INV_SQRT2 = 0.7071067811865476
_NEG_BIG = 1e30  # additive mask value (finite -> no -inf - -inf NaN hazard)


def _attention_pool_classify_kernel(
    lhs_ref,    # (Nb, S, H)  bf16 last_hidden_state tile
    mask_ref,   # (Nb, S)     f32 attention mask tile (lane-dense over S)
    w1_ref,     # (H, H)      bf16 attention Linear #1 weight (x @ w1)
    b1_ref,     # (1, H)      f32
    gamma_ref,  # (1, H)      f32 LayerNorm weight
    beta_ref,   # (1, H)      f32 LayerNorm bias
    w2_ref,     # (1, H)      f32 attention Linear #2 weight (row vector)
    wc_ref,     # (1, H)      f32 classifier weight (row vector)
    b2_ref,     # (1,)        f32 scalar in SMEM
    bc_ref,     # (1,)        f32 scalar in SMEM
    out_ref,    # (1, 1, Nb)  f32 per-tile logits (lane-dense)
):
    Nb, S, H = lhs_ref.shape

    x_bf = lhs_ref[...]                              # (Nb, S, H) bf16
    # Free re-view (S padded to a multiple of 8 by the wrapper): merge
    # batch*seq rows into one big MXU matmul.
    x2 = x_bf.reshape(Nb * S, H)

    # --- AttentionPooling.attention ---
    # Linear(H, H): bf16 inputs, f32 accumulation on the MXU.
    h = jnp.dot(x2, w1_ref[...], preferred_element_type=jnp.float32)
    h = h + b1_ref[...]

    # LayerNorm(H), eps = 1e-5 (torch default), f32, single-pass statistics.
    mu = jnp.mean(h, axis=-1, keepdims=True)
    ms = jnp.mean(h * h, axis=-1, keepdims=True)
    var = jnp.maximum(ms - mu * mu, 0.0)
    hn = (h - mu) * jax.lax.rsqrt(var + 1e-5)
    hn = hn * gamma_ref[...] + beta_ref[...]

    # GELU (exact / erf form, matching torch nn.GELU default), f32.
    g = 0.5 * hn * (1.0 + jax.lax.erf(hn * INV_SQRT2))

    # Linear(H, 1) done on the VPU (multiply + lane reduce) -> lane-dense
    # (Nb, S) scores.
    g3 = g.reshape(Nb, S, H)
    scores = jnp.sum(g3 * w2_ref[...], axis=-1) + b2_ref[0]       # (Nb, S)

    # w[attention_mask == 0] = -inf, as an additive large-negative mask.
    scores = scores + (mask_ref[...] - 1.0) * _NEG_BIG

    # softmax over the sequence dim (torch dim=1): lane reduce over S.
    smax = jnp.max(scores, axis=-1, keepdims=True)
    e = jnp.exp(scores - smax)
    w = e / jnp.sum(e, axis=-1, keepdims=True)                    # (Nb, S)

    # Dropout(p=0.3) -> identity at inference.
    # Classifier fused into the pooling (pure sum reorder):
    #   logit_b = sum_s w_bs * (x_bs . wc) + bc
    # c rides the same VPU-multiply + lane-reduce pattern as the scores; no
    # (Nb,S,H) fp32 temporary, no (Nb,H) pooled tensor, no M=1 MXU matmul.
    c = jnp.sum(x_bf * wc_ref[...], axis=-1)                      # (Nb, S) f32
    logit = jnp.sum(w * c, axis=-1) + bc_ref[0]                   # (Nb,)

    out_ref[...] = logit.reshape(1, 1, Nb)


def _vmem_capacity_bytes():
    try:
        return int(pltpu.get_tpu_info().vmem_capacity_bytes)
    except Exception:
        return 64 << 20  # conservative: v7x per-TensorCore VMEM


def _derive_block_n(N, S, H, budget_bytes):
    """Largest Nb (multiple of 8) whose per-step working set fits the budget."""
    # Per-sequence VMEM footprint (bytes) inside one grid step:
    #   double-buffered bf16 input tile : 2 * S*H*2
    #   f32 intermediates h / hn / g    : 3 * S*H*4
    #   lane-dense f32 mask/score rows  : ~6 * S*4
    per_seq = 2 * S * H * 2 + 3 * S * H * 4 + 6 * S * 4
    # Grid-invariant operands (w1 double-buffered bf16 + small f32 vectors)
    # plus slack for compiler scratch.
    fixed = 2 * H * H * 2 + 8 * H * 4 + (1 << 20)
    nb = (budget_bytes - fixed) // max(per_seq, 1)
    n_pad8 = -(-N // 8) * 8
    nb = max(8, min(int(nb), n_pad8))
    nb = (nb // 8) * 8
    # Prefer M = Nb*S to be a multiple of 256 (v6e/v7x MXU M fill; also a
    # multiple of 128 for v5e) once the tile is big enough.
    if nb * S >= 512:
        step = max(8, 256 // math.gcd(256, S))
        step = -(-step // 8) * 8
        if nb >= step:
            nb = (nb // step) * step
    return nb


def attention_pool_and_classify(last_hidden_state, attention_mask, params,
                                block_n=None):
    """AttentionPooling + classifier over N = batch*num_choices sequences."""
    N, S, H = last_hidden_state.shape

    vmem_cap = _vmem_capacity_bytes()
    # ~3/4 of per-core VMEM, capped at 96 MiB: -> ~48 MiB on v7x (64 MiB/TC),
    # ~96 MiB on v5e/v6e (128 MiB).
    budget = min((vmem_cap * 3) // 4, 96 << 20)
    vmem_limit = int(min(vmem_cap - (4 << 20), budget + (16 << 20)))

    if block_n is None:
        Nb = _derive_block_n(N, S, H, budget)
    else:
        Nb = max(8, ((int(block_n) + 7) // 8) * 8)

    n_tiles = -(-N // Nb)           # cdiv
    N_pad = n_tiles * Nb
    S_pad = -(-S // 8) * 8          # keep (Nb,S,H)->(Nb*S,H) a free view

    lhs = last_hidden_state.astype(jnp.bfloat16)       # halve HBM->VMEM stream
    mask = attention_mask.reshape(N, S).astype(jnp.float32)
    if (N_pad, S_pad) != (N, S):
        lhs = jnp.pad(lhs, ((0, N_pad - N), (0, S_pad - S), (0, 0)))
        mask = jnp.pad(mask, ((0, N_pad - N), (0, S_pad - S)))  # padding masked

    w1 = params["w1"].astype(jnp.bfloat16)

    # Advisory cost estimate: w1 matmul flops + elementwise, erf + exp
    # transcendentals, bf16 activation stream bytes.
    cost = pl.CostEstimate(
        flops=2 * N_pad * S_pad * H * H + 12 * N_pad * S_pad * H,
        transcendentals=N_pad * S_pad * H + N_pad * S_pad,
        bytes_accessed=(N_pad * S_pad * H * 2 + N_pad * S_pad * 4
                        + H * H * 2 + 8 * H * 4 + N_pad * 4),
    )

    out = pl.pallas_call(
        _attention_pool_classify_kernel,
        out_shape=jax.ShapeDtypeStruct((n_tiles, 1, Nb), jnp.float32),
        grid=(n_tiles,),
        in_specs=[
            pl.BlockSpec((Nb, S_pad, H), lambda i: (i, 0, 0)),   # activations
            pl.BlockSpec((Nb, S_pad), lambda i: (i, 0)),         # mask (lanes=S)
            pl.BlockSpec((H, H), lambda i: (0, 0)),              # w1
            pl.BlockSpec((1, H), lambda i: (0, 0)),              # b1
            pl.BlockSpec((1, H), lambda i: (0, 0)),              # gamma
            pl.BlockSpec((1, H), lambda i: (0, 0)),              # beta
            pl.BlockSpec((1, H), lambda i: (0, 0)),              # w2 row
            pl.BlockSpec((1, H), lambda i: (0, 0)),              # wc row
            pl.BlockSpec(memory_space=pltpu.MemorySpace.SMEM),   # b2 scalar
            pl.BlockSpec(memory_space=pltpu.MemorySpace.SMEM),   # bc scalar
        ],
        # Per-step output block (written exactly once per grid step) -> safe to
        # mark the batch axis "parallel" (megacore sharding on v7x).
        out_specs=pl.BlockSpec((1, 1, Nb), lambda i: (i, 0, 0)),
        compiler_params=pltpu.CompilerParams(
            dimension_semantics=("parallel",),
            vmem_limit_bytes=vmem_limit),
        cost_estimate=cost,
    )(
        lhs, mask, w1,
        params["b1"], params["gamma"], params["beta"],
        params["w2"], params["wc"], params["b2"], params["bc"],
    )
    return out.reshape(N_pad)[:N]


# TODO(synk): the full pretrained BERT encoder has no clean Pallas equivalent
# here; a deterministic embedding-sum stand-in produces last_hidden_state.
def synthetic_bert_last_hidden_state(input_ids, token_type_ids, params):
    tok = params["tok_emb"][input_ids]                      # (N, S, H)
    typ = params["type_emb"][token_type_ids]                # (N, S, H)
    pos = params["pos_emb"][None, : input_ids.shape[1], :]  # (1, S, H)
    return jnp.tanh(tok + typ + pos).astype(jnp.float32)


def match_model1_forward(input_ids, attention_mask, token_type_ids, params,
                         num_choices=5, block_n=None):
    S = input_ids.shape[-1]
    ids = input_ids.reshape(-1, S)
    am = attention_mask.reshape(-1, S)
    tt = token_type_ids.reshape(-1, S)
    last_hidden_state = synthetic_bert_last_hidden_state(ids, tt, params)
    logits = attention_pool_and_classify(last_hidden_state, am, params,
                                         block_n=block_n)   # (N,)
    return logits.reshape(-1, num_choices)


def _reference_forward(input_ids, attention_mask, token_type_ids, params,
                       num_choices=5):
    """Pure-JAX reference of the same math (torch op order, bf16-quantized x)."""
    S = input_ids.shape[-1]
    ids = input_ids.reshape(-1, S)
    am = attention_mask.reshape(-1, S).astype(jnp.float32)
    tt = token_type_ids.reshape(-1, S)
    x = synthetic_bert_last_hidden_state(ids, tt, params)
    x_bf = x.astype(jnp.bfloat16)
    h = jnp.dot(x_bf, params["w1"].astype(jnp.bfloat16),
                preferred_element_type=jnp.float32) + params["b1"]
    mu = h.mean(-1, keepdims=True)
    var = ((h - mu) ** 2).mean(-1, keepdims=True)
    hn = (h - mu) * jax.lax.rsqrt(var + 1e-5) * params["gamma"] + params["beta"]
    g = 0.5 * hn * (1.0 + jax.lax.erf(hn * INV_SQRT2))
    scores = jnp.sum(g * params["w2"], axis=-1) + params["b2"][0]   # (N, S)
    scores = scores + (am - 1.0) * _NEG_BIG
    smax = scores.max(-1, keepdims=True)
    e = jnp.exp(scores - smax)
    w = e / e.sum(-1, keepdims=True)                                # (N, S)
    pooled = jnp.sum(w[..., None] * x_bf.astype(jnp.float32), axis=1)  # (N, H)
    logits = pooled @ params["wc"].T + params["bc"]                 # (N, 1)
    return logits.reshape(-1, num_choices)


def init_params(key, hidden, vocab, max_seq, n_types=2):
    ks = jax.random.split(key, 10)
    s = 0.02
    return {
        # AttentionPooling
        "w1": jax.random.normal(ks[0], (hidden, hidden), jnp.float32) * s,
        "b1": jax.random.normal(ks[1], (1, hidden), jnp.float32) * s,
        "gamma": jnp.ones((1, hidden), jnp.float32),
        "beta": jax.random.normal(ks[2], (1, hidden), jnp.float32) * s,
        "w2": jax.random.normal(ks[3], (1, hidden), jnp.float32) * s,
        "b2": jax.random.normal(ks[4], (1,), jnp.float32) * s,
        # classifier
        "wc": jax.random.normal(ks[5], (1, hidden), jnp.float32) * s,
        "bc": jax.random.normal(ks[6], (1,), jnp.float32) * s,
        # synthetic BERT stand-in embeddings
        "tok_emb": jax.random.normal(ks[7], (vocab, hidden), jnp.float32) * s,
        "type_emb": jax.random.normal(ks[8], (n_types, hidden), jnp.float32) * s,
        "pos_emb": jax.random.normal(ks[9], (max_seq, hidden), jnp.float32) * s,
    }


if __name__ == "__main__":
    batch, num_choices, seq, hidden, vocab = 2, 5, 8, 32, 100
    key = jax.random.PRNGKey(0)
    k_ids, k_len, k_params = jax.random.split(key, 3)

    input_ids = jax.random.randint(k_ids, (batch, num_choices, seq), 0, vocab,
                                   dtype=jnp.int32)
    # at least 3 valid tokens per row
    lengths = jax.random.randint(k_len, (batch, num_choices, 1), 3, seq + 1,
                                 dtype=jnp.int32)
    positions = jnp.arange(seq, dtype=jnp.int32)[None, None, :]
    attention_mask = (positions < lengths).astype(jnp.int32)
    token_type_ids = jnp.zeros((batch, num_choices, seq), jnp.int32)

    params = init_params(k_params, hidden, vocab, seq)
    ref = _reference_forward(input_ids, attention_mask, token_type_ids,
                             params, num_choices)

    # 1) VMEM-budget-derived tile size (single tile at these toy shapes).
    out = match_model1_forward(input_ids, attention_mask, token_type_ids,
                               params, num_choices)
    out = jax.block_until_ready(out)
    assert out.shape == (batch, num_choices), out.shape
    assert jnp.allclose(out, ref, atol=1e-3, rtol=1e-3), (out, ref)

    # 2) Forced small tile (N=10, Nb=8 -> 2 grid steps) to exercise the
    #    multi-tile + fully-masked-padding path.
    out2 = match_model1_forward(input_ids, attention_mask, token_type_ids,
                                params, num_choices, block_n=8)
    out2 = jax.block_until_ready(out2)
    assert jnp.allclose(out2, ref, atol=1e-3, rtol=1e-3), (out2, ref)

    print("KERNEL_OK")
</pallas_src>

<mosaic_0001>
module attributes {stable_mosaic.version = 11 : i64} {
  func.func @_attention_pool_classify_kernel(%arg0: i32, %arg1: memref<16x8x32xbf16, #tpu.memory_space<vmem>>, %arg2: memref<16x8xf32, #tpu.memory_space<vmem>>, %arg3: memref<32x32xbf16, #tpu.memory_space<vmem>>, %arg4: memref<1x32xf32, #tpu.memory_space<vmem>>, %arg5: memref<1x32xf32, #tpu.memory_space<vmem>>, %arg6: memref<1x32xf32, #tpu.memory_space<vmem>>, %arg7: memref<1x32xf32, #tpu.memory_space<vmem>>, %arg8: memref<1x32xf32, #tpu.memory_space<vmem>>, %arg9: memref<1xf32, #tpu.memory_space<smem>>, %arg10: memref<1xf32, #tpu.memory_space<smem>>, %arg11: memref<1x1x16xf32, #tpu.memory_space<vmem>>) attributes {dimension_semantics = [#tpu.dimension_semantics<parallel>], iteration_bounds = array<i64: 1>, scalar_prefetch = 0 : i64, scratch_operands = 0 : i64, tpu.core_type = #tpu.core_type<tc>, window_params = [{transform_indices = @transform_0, window_bounds = array<i64: 16, 8, 32>}, {transform_indices = @transform_1, window_bounds = array<i64: 16, 8>}, {pipeline_mode = #tpu.pipeline_mode<synchronous>, transform_indices = @transform_2, window_bounds = array<i64: 32, 32>}, {pipeline_mode = #tpu.pipeline_mode<synchronous>, transform_indices = @transform_3, window_bounds = array<i64: 1, 32>}, {pipeline_mode = #tpu.pipeline_mode<synchronous>, transform_indices = @transform_4, window_bounds = array<i64: 1, 32>}, {pipeline_mode = #tpu.pipeline_mode<synchronous>, transform_indices = @transform_5, window_bounds = array<i64: 1, 32>}, {pipeline_mode = #tpu.pipeline_mode<synchronous>, transform_indices = @transform_6, window_bounds = array<i64: 1, 32>}, {pipeline_mode = #tpu.pipeline_mode<synchronous>, transform_indices = @transform_7, window_bounds = array<i64: 1, 32>}, {transform_indices = @transform_8, window_bounds = array<i64: 1>}, {transform_indices = @transform_9, window_bounds = array<i64: 1>}, {transform_indices = @transform_10, window_bounds = array<i64: 1, 1, 16>}]} {
    %c0 = arith.constant 0 : index
    %c0_0 = arith.constant 0 : index
    %c0_1 = arith.constant 0 : index
    %0 = vector.load %arg1[%c0, %c0_0, %c0_1] : memref<16x8x32xbf16, #tpu.memory_space<vmem>>, vector<16x8x32xbf16>
    %1 = vector.shape_cast %0 : vector<16x8x32xbf16> to vector<128x32xbf16>
    %c0_2 = arith.constant 0 : index
    %c0_3 = arith.constant 0 : index
    %2 = vector.load %arg3[%c0_2, %c0_3] : memref<32x32xbf16, #tpu.memory_space<vmem>>, vector<32x32xbf16>
    %cst = arith.constant dense<0.000000e+00> : vector<128x32xf32>
    %3 = tpu.matmul %1, %2, %cst {dimension_numbers = #tpu.dot_dimension_numbers<[1], [0], [0], [1], [0, 0, 1, 1], [], []>} : vector<128x32xbf16>, vector<32x32xbf16>, vector<128x32xf32> -> vector<128x32xf32>
    %c0_4 = arith.constant 0 : index
    %c0_5 = arith.constant 0 : index
    %4 = vector.load %arg4[%c0_4, %c0_5] : memref<1x32xf32, #tpu.memory_space<vmem>>, vector<1x32xf32>
    %5 = vector.broadcast %4 : vector<1x32xf32> to vector<128x32xf32>
    %6 = arith.addf %3, %5 : vector<128x32xf32>
    %cst_6 = arith.constant dense<0.000000e+00> : vector<128xf32>
    %7 = vector.multi_reduction <add>, %6, %cst_6 [1] : vector<128x32xf32> to vector<128xf32>
    %8 = vector.shape_cast %7 : vector<128xf32> to vector<128x1xf32>
    %cst_7 = arith.constant 3.200000e+01 : f32
    %9 = vector.broadcast %cst_7 : f32 to vector<128x1xf32>
    %10 = arith.divf %8, %9 : vector<128x1xf32>
    %11 = arith.mulf %6, %6 : vector<128x32xf32>
    %cst_8 = arith.constant dense<0.000000e+00> : vector<128xf32>
    %12 = vector.multi_reduction <add>, %11, %cst_8 [1] : vector<128x32xf32> to vector<128xf32>
    %13 = vector.shape_cast %12 : vector<128xf32> to vector<128x1xf32>
    %cst_9 = arith.constant 3.200000e+01 : f32
    %14 = vector.broadcast %cst_9 : f32 to vector<128x1xf32>
    %15 = arith.divf %13, %14 : vector<128x1xf32>
    %16 = arith.mulf %10, %10 : vector<128x1xf32>
    %17 = arith.subf %15, %16 : vector<128x1xf32>
    %cst_10 = arith.constant 0.000000e+00 : f32
    %18 = vector.broadcast %cst_10 : f32 to vector<128x1xf32>
    %19 = arith.maximumf %17, %18 : vector<128x1xf32>
    %20 = vector.broadcast %10 : vector<128x1xf32> to vector<128x32xf32>
    %21 = arith.subf %6, %20 : vector<128x32xf32>
    %cst_11 = arith.constant 9.99999974E-6 : f32
    %22 = vector.broadcast %cst_11 : f32 to vector<128x1xf32>
    %23 = arith.addf %19, %22 : vector<128x1xf32>
    %24 = math.rsqrt %23 : vector<128x1xf32>
    %25 = vector.broadcast %24 : vector<128x1xf32> to vector<128x32xf32>
    %26 = arith.mulf %21, %25 : vector<128x32xf32>
    %c0_12 = arith.constant 0 : index
    %c0_13 = arith.constant 0 : index
    %27 = vector.load %arg5[%c0_12, %c0_13] : memref<1x32xf32, #tpu.memory_space<vmem>>, vector<1x32xf32>
    %28 = vector.broadcast %27 : vector<1x32xf32> to vector<128x32xf32>
    %29 = arith.mulf %26, %28 : vector<128x32xf32>
    %c0_14 = arith.constant 0 : index
    %c0_15 = arith.constant 0 : index
    %30 = vector.load %arg6[%c0_14, %c0_15] : memref<1x32xf32, #tpu.memory_space<vmem>>, vector<1x32xf32>
    %31 = vector.broadcast %30 : vector<1x32xf32> to vector<128x32xf32>
    %32 = arith.addf %29, %31 : vector<128x32xf32>
    %cst_16 = arith.constant 5.000000e-01 : f32
    %33 = vector.broadcast %cst_16 : f32 to vector<128x32xf32>
    %34 = arith.mulf %33, %32 : vector<128x32xf32>
    %cst_17 = arith.constant 0.707106769 : f32
    %35 = vector.broadcast %cst_17 : f32 to vector<128x32xf32>
    %36 = arith.mulf %32, %35 : vector<128x32xf32>
    %37 = math.erf %36 : vector<128x32xf32>
    %cst_18 = arith.constant 1.000000e+00 : f32
    %38 = vector.broadcast %cst_18 : f32 to vector<128x32xf32>
    %39 = arith.addf %38, %37 : vector<128x32xf32>
    %40 = arith.mulf %34, %39 : vector<128x32xf32>
    %41 = vector.shape_cast %40 : vector<128x32xf32> to vector<16x8x32xf32>
    %c0_19 = arith.constant 0 : index
    %c0_20 = arith.constant 0 : index
    %42 = vector.load %arg7[%c0_19, %c0_20] : memref<1x32xf32, #tpu.memory_space<vmem>>, vector<1x32xf32>
    %43 = vector.shape_cast %42 : vector<1x32xf32> to vector<1x1x32xf32>
    %44 = vector.broadcast %43 : vector<1x1x32xf32> to vector<16x8x32xf32>
    %45 = arith.mulf %41, %44 : vector<16x8x32xf32>
    %cst_21 = arith.constant dense<0.000000e+00> : vector<16x8xf32>
    %46 = vector.multi_reduction <add>, %45, %cst_21 [2] : vector<16x8x32xf32> to vector<16x8xf32>
    %c0_22 = arith.constant 0 : index
    %47 = memref.load %arg9[%c0_22] : memref<1xf32, #tpu.memory_space<smem>>
    %48 = vector.broadcast %47 : f32 to vector<16x8xf32>
    %49 = arith.addf %46, %48 : vector<16x8xf32>
    %c0_23 = arith.constant 0 : index
    %c0_24 = arith.constant 0 : index
    %50 = vector.load %arg2[%c0_23, %c0_24] : memref<16x8xf32, #tpu.memory_space<vmem>>, vector<16x8xf32>
    %cst_25 = arith.constant 1.000000e+00 : f32
    %51 = vector.broadcast %cst_25 : f32 to vector<16x8xf32>
    %52 = arith.subf %50, %51 : vector<16x8xf32>
    %cst_26 = arith.constant 1.000000e+30 : f32
    %53 = vector.broadcast %cst_26 : f32 to vector<16x8xf32>
    %54 = arith.mulf %52, %53 : vector<16x8xf32>
    %55 = arith.addf %49, %54 : vector<16x8xf32>
    %cst_27 = arith.constant dense<0xFF800000> : vector<16xf32>
    %56 = vector.multi_reduction <maximumf>, %55, %cst_27 [1] : vector<16x8xf32> to vector<16xf32>
    %57 = vector.shape_cast %56 : vector<16xf32> to vector<16x1xf32>
    %58 = vector.broadcast %57 : vector<16x1xf32> to vector<16x8xf32>
    %59 = arith.subf %55, %58 : vector<16x8xf32>
    %60 = math.exp %59 : vector<16x8xf32>
    %cst_28 = arith.constant dense<0.000000e+00> : vector<16xf32>
    %61 = vector.multi_reduction <add>, %60, %cst_28 [1] : vector<16x8xf32> to vector<16xf32>
    %62 = vector.shape_cast %61 : vector<16xf32> to vector<16x1xf32>
    %63 = vector.broadcast %62 : vector<16x1xf32> to vector<16x8xf32>
    %64 = arith.divf %60, %63 : vector<16x8xf32>
    %c0_29 = arith.constant 0 : index
    %c0_30 = arith.constant 0 : index
    %65 = vector.load %arg8[%c0_29, %c0_30] : memref<1x32xf32, #tpu.memory_space<vmem>>, vector<1x32xf32>
    %66 = arith.extf %0 : vector<16x8x32xbf16> to vector<16x8x32xf32>
    %67 = vector.shape_cast %65 : vector<1x32xf32> to vector<1x1x32xf32>
    %68 = vector.broadcast %67 : vector<1x1x32xf32> to vector<16x8x32xf32>
    %69 = arith.mulf %66, %68 : vector<16x8x32xf32>
    %cst_31 = arith.constant dense<0.000000e+00> : vector<16x8xf32>
    %70 = vector.multi_reduction <add>, %69, %cst_31 [2] : vector<16x8x32xf32> to vector<16x8xf32>
    %71 = arith.mulf %64, %70 : vector<16x8xf32>
    %cst_32 = arith.constant dense<0.000000e+00> : vector<16xf32>
    %72 = vector.multi_reduction <add>, %71, %cst_32 [1] : vector<16x8xf32> to vector<16xf32>
    %c0_33 = arith.constant 0 : index
    %73 = memref.load %arg10[%c0_33] : memref<1xf32, #tpu.memory_space<smem>>
    %74 = vector.broadcast %73 : f32 to vector<16xf32>
    %75 = arith.addf %72, %74 : vector<16xf32>
    %76 = vector.shape_cast %75 : vector<16xf32> to vector<1x1x16xf32>
    %c0_34 = arith.constant 0 : index
    %c0_35 = arith.constant 0 : index
    %c0_36 = arith.constant 0 : index
    %77 = vector.load %arg11[%c0_34, %c0_35, %c0_36] : memref<1x1x16xf32, #tpu.memory_space<vmem>>, vector<1x1x16xf32>
    tpu.vector_store %arg11[%c0_34, %c0_35, %c0_36], %76 {strides = array<i32>} : memref<1x1x16xf32, #tpu.memory_space<vmem>>, vector<1x1x16xf32>,
    return
  }
  func.func @transform_0(%arg0: i32) -> (i32, i32, i32) {
    %c0_i32 = arith.constant 0 : i32
    %c0_i32_0 = arith.constant 0 : i32
    %c0_i32_1 = arith.constant 0 : i32
    return %arg0, %c0_i32, %c0_i32_0 : i32, i32, i32
  }
  func.func @transform_1(%arg0: i32) -> (i32, i32) {
    %c0_i32 = arith.constant 0 : i32
    %c0_i32_0 = arith.constant 0 : i32
    return %arg0, %c0_i32 : i32, i32
  }
  func.func @transform_2(%arg0: i32) -> (i32, i32) {
    %c0_i32 = arith.constant 0 : i32
    %c0_i32_0 = arith.constant 0 : i32
    %c0_i32_1 = arith.constant 0 : i32
    return %c0_i32, %c0_i32_0 : i32, i32
  }
  func.func @transform_3(%arg0: i32) -> (i32, i32) {
    %c0_i32 = arith.constant 0 : i32
    %c0_i32_0 = arith.constant 0 : i32
    %c0_i32_1 = arith.constant 0 : i32
    return %c0_i32, %c0_i32_0 : i32, i32
  }
  func.func @transform_4(%arg0: i32) -> (i32, i32) {
    %c0_i32 = arith.constant 0 : i32
    %c0_i32_0 = arith.constant 0 : i32
    %c0_i32_1 = arith.constant 0 : i32
    return %c0_i32, %c0_i32_0 : i32, i32
  }
  func.func @transform_5(%arg0: i32) -> (i32, i32) {
    %c0_i32 = arith.constant 0 : i32
    %c0_i32_0 = arith.constant 0 : i32
    %c0_i32_1 = arith.constant 0 : i32
    return %c0_i32, %c0_i32_0 : i32, i32
  }
  func.func @transform_6(%arg0: i32) -> (i32, i32) {
    %c0_i32 = arith.constant 0 : i32
    %c0_i32_0 = arith.constant 0 : i32
    %c0_i32_1 = arith.constant 0 : i32
    return %c0_i32, %c0_i32_0 : i32, i32
  }
  func.func @transform_7(%arg0: i32) -> (i32, i32) {
    %c0_i32 = arith.constant 0 : i32
    %c0_i32_0 = arith.constant 0 : i32
    %c0_i32_1 = arith.constant 0 : i32
    return %c0_i32, %c0_i32_0 : i32, i32
  }
  func.func @transform_8(%arg0: i32) -> i32 {
    %c0_i32 = arith.constant 0 : i32
    %c0_i32_0 = arith.constant 0 : i32
    return %c0_i32 : i32
  }
  func.func @transform_9(%arg0: i32) -> i32 {
    %c0_i32 = arith.constant 0 : i32
    %c0_i32_0 = arith.constant 0 : i32
    return %c0_i32 : i32
  }
  func.func @transform_10(%arg0: i32) -> (i32, i32, i32) {
    %c0_i32 = arith.constant 0 : i32
    %c0_i32_0 = arith.constant 0 : i32
    %c0_i32_1 = arith.constant 0 : i32
    return %arg0, %c0_i32, %c0_i32_0 : i32, i32, i32
  }
}

</mosaic_0001>

<bundles_post_ra>
// kernel: tpu_custom_call.1
= control target key start
LH: loop header
LB: loop body
LE: loop exit
PB: predicated region body
PF: predicated region fallthrough
CT: control target
= control target key end

     0   :  { %17 = vsyncpa [#allocation5], 0  ;;  %s2843_s0 = inlined_call_operand.hbm [shape: bf16[16,8,32], index: 0, kind: input, shape index: {}]   ;;  %s2844_s1 = inlined_call_operand.vmem [shape: f32[16,8], index: 1, kind: input, shape index: {}]   ;;  %s2845_s2 = inlined_call_operand.vmem [shape: bf16[32,32], index: 2, kind: input, shape index: {}]   ;;  %s2846_s3 = inlined_call_operand.vmem [shape: f32[1,32], index: 3, kind: input, shape index: {}]   ;;  %s2847_s4 = inlined_call_operand.vmem [shape: f32[1,32], index: 4, kind: input, shape index: {}]   ;;  %s2848_s5 = inlined_call_operand.vmem [shape: f32[1,32], index: 5, kind: input, shape index: {}]   ;;  %s2849_s6 = inlined_call_operand.vmem [shape: f32[1,32], index: 6, kind: input, shape index: {}]   ;;  %s2850_s7 = inlined_call_operand.vmem [shape: f32[1,32], index: 7, kind: input, shape index: {}]   ;;  %s2851_s8 = inlined_call_operand.<no memory space> [shape: f32[1], index: 8, kind: input, shape index: {}]   ;;  %s2852_s9 = inlined_call_operand.<no memory space> [shape: f32[1], index: 9, kind: input, shape index: {}]   ;;  %s2853_s10 = inlined_call_operand.hbm [shape: f32[1,1,16], index: 10, kind: output, shape index: {}]  }
   0x1   :  { %18 = vsyncpa [#allocation6], 0  ;;  %s1984_s13 = smov [#allocation4]  }
   0x2   :  { %s24_s14 = sshll.u32 %s1984_s13, 4  ;;  %s25_s14 = int_to_ptr.vmem [resolvable:$true] %s24_s14 }
   0x3   :  { %s1948_s15 = scalar_lea.vmem %s25_s14, 1024  ;;  %p1953_p1 = scmp.lt.s32.totalorder %s25_s14, %s25_s14 }
   0x4   :  { %p1949_p0 = scmp.ne.s32.totalorder %s25_s14, %s1948_s15  ;;  %p1954_p2 = scmp.lt.s32.totalorder %s1948_s15, %s1948_s15 }
   0x6   :  { %p1955_p3 = por %p1954_p2, %p1953_p1 }
   0x8   :  { %p1956_p4 = pnand %p1955_p3, %p1949_p0 }
   0xa   :  { %1959 = shalt.err (!%p1956_p4)
}
   0xb   :  { %s1985_s16 = smov 64   ;;  %s1986_s17 = smov 4  }
   0xc   :  { %30 = dma.hbm_to_vmem [thread:$0]  %s2843_s0, 1024, %s25_s14, [#allocation5], %s1985_s16, %s1985_s16, %s1986_s17  }
   0xd   :  { %1980 = dma.done.wait [#allocation5], 1024  }
   0xe   :  { %1981 = vsyncadd [#allocation5], 4294966272  ;;  %v1786_v0 = vld [vmem:[%s2845_s2 + $0x8] sm:$0xff]   ;;  %v1787_v1 = vld [vmem:[%s2845_s2] sm:$0xff]   ;;  %vm132_vm0 = vcmask 261120   ;;  %vm1008_vm1 = vcmask 1041409  }
   0xf   :  { %1755 = vmatprep.subr.bf16.mxu0 %v1786_v0  ;;  %1775 = vmatprep.subr.bf16.mxu1 %v1786_v0  ;;  %v53_v2 = vld [vmem:[#allocation4] sm:$0xff]   ;;  %v55_v4 = vld [vmem:[#allocation4 + $0x8] sm:$0xff]   ;;  %v65_v6 = vld [vmem:[#allocation4 + $0x30] sm:$0xff]   ;;  %vm1010_vm2 = vcmask 1042434   ;;  %vm1014_vm3 = vcmask 1044484   ;;  %vm1012_vm4 = vcmask 1043459  }
  0x10   :  { %v61_v3 = vld [vmem:[#allocation4 + $0x20] sm:$0xff]   ;;  %1756 = vmatpush3.bf16.msra.mxu0 %v1786_v0  ;;  %1777 = vmatpush3.bf16.msra.mxu1 %v1786_v0  ;;  %v63_v5 = vld [vmem:[#allocation4 + $0x28] sm:$0xff]   ;;  %v57_v7 = vld [vmem:[#allocation4 + $0x10] sm:$0xff]   ;;  %vm1016_vm5 = vcmask 1045509   ;;  %vm1018_vm6 = vcmask 1046534   ;;  %vm1020_vm7 = vcmask 1047559  }
  0x11   :  { %1757 = vmatprep.subr.bf16.mxu0 %v1787_v1  ;;  %1776 = vmatprep.subr.bf16.mxu1 %v1787_v1  ;;  %v67_v8 = vld [vmem:[#allocation4 + $0x38] sm:$0xff]   ;;  %v2064_v10 = vld [vmem:[%s2846_s3] ss:$0 sm:$0xff]  ;;  %vm1031_vm8 = vcmask 64512   ;;  %s1988_s13 = smov [#allocation7]   ;;  %vm1700_vm9 = vcmask 130112  }
  0x12   :  { %1759 = vmatprep.mubr.msk.bf16.mxu0 %vm132_vm0, %v53_v2  ;;  %1767 = vmatprep.mubr.msk.bf16.mxu1 %vm132_vm0, %v61_v3  ;;  %v59_v9 = vld [vmem:[#allocation4 + $0x18] sm:$0xff]   ;;  %s1711_s14 = sshll.u32 %s1988_s13, 4  ;;  %vm1703_vm10 = vcmask 122880   ;;  %s1712_s14 = int_to_ptr.vmem [resolvable:$true] %s1711_s14 }
  0x13   :  { %s1960_s15 = scalar_lea.vmem %s1712_s14, 16  ;;  %s1964_s16 = scalar_lea.vmem %s1712_s14, 32 }
  0x14   :  { %1758 = vmatpush3.bf16.msra.mxu0 %v1787_v1  ;;  %1778 = vmatpush3.bf16.msra.mxu1 %v1787_v1  ;;  %p1961_p5 = scmp.ne.s32.totalorder %s1712_s14, %s1960_s15  ;;  %p1965_p6 = scmp.lt.s32.totalorder %s1712_s14, %s1712_s14 }
  0x15   :  { %p1966_p7 = scmp.lt.s32.totalorder %s1964_s16, %s1960_s15 }
  0x17   :  { %1760 = vmatmul.mubr.msk.bf16.vlgmr.msra.gmra.mxu0 %vm132_vm0, %v55_v4  ;;  %1768 = vmatmul.mubr.msk.bf16.vlgmr.msra.gmra.mxu1 %vm132_vm0, %v63_v5  ;;  %p1967_p8 = por %p1966_p7, %p1965_p6 }
  0x18   :  { %1771 = vmatprep.mubr.msk.bf16.mxu1 %vm132_vm0, %v65_v6  ;;  %1763 = vmatprep.mubr.msk.bf16.mxu0 %vm132_vm0, %v57_v7 }
  0x19   :  { %p1968_p9 = pnand %p1967_p8, %p1961_p5 }
  0x1f   :  { %1772 = vmatmul.mubr.msk.bf16.gmra.mxu1 %vm132_vm0, %v67_v8  ;;  %1764 = vmatmul.mubr.msk.bf16.gmra.mxu0 %vm132_vm0, %v59_v9 }
  0xd7   :  { %v1761_v11 = vpop.f32.mrf.mxu0  ;;  %v1769_v12 = vpop.f32.mrf.mxu1 }
  0xd8   :  { %v2067_v13 = vadd.f32 %v1761_v11, %v2064_v10  ;;  %v2070_v14 = vadd.f32 %v1769_v12, %v2064_v10 }
  0xd9   :  { %v223_v15 = vpop.f32.mrf.mxu1  ;;  %v191_v16 = vpop.f32.mrf.mxu0 }
  0xda   :  { %v2073_v17 = vadd.f32 %v2064_v10, %v223_v15  ;;  %v284_v18 = vsel %vm132_vm0, %v2070_v14, 0.0  ;;  %v260_v19 = vsel %vm132_vm0, %v2067_v13, 0.0  ;;  %v2080_v20 = vadd.f32 %v2064_v10, %v191_v16 }
  0xdb   :  { %285 = vadd.xlane.f32.xlu1 %v284_v18  ;;  %261 = vadd.xlane.f32.xlu0 %v260_v19  ;;  %v321_v22 = vmul.f32 %v2067_v13, %v2067_v13  ;;  %v1762_v23 = vpop.f32.mrf.mxu0  ;;  %v329_v25 = vmul.f32 %v2070_v14, %v2070_v14  ;;  %v1770_v26 = vpop.f32.mrf.mxu1 }
  0xdc   :  { %v254_v21 = vsel %vm132_vm0, %v2080_v20, 0.0  ;;  %v278_v24 = vsel %vm132_vm0, %v2073_v17, 0.0  ;;  %v2091_v27 = vadd.f32 %v1762_v23, %v2064_v10  ;;  %v2095_v29 = vadd.f32 %v1770_v26, %v2064_v10 }
  0xdd   :  { %v341_v28 = vsel %vm132_vm0, %v321_v22, 0.0  ;;  %v365_v30 = vsel %vm132_vm0, %v329_v25, 0.0  ;;  %v226_v31 = vpop.f32.mrf.mxu1  ;;  %v319_v33 = vmul.f32 %v2080_v20, %v2080_v20  ;;  %v194_v36 = vpop.f32.mrf.mxu0  ;;  %v327_v41 = vmul.f32 %v2073_v17, %v2073_v17 }
  0xde   :  { %v263_v32 = vsel %vm132_vm0, %v2091_v27, 0.0  ;;  %v2103_v34 = vadd.f32 %v2064_v10, %v226_v31  ;;  %v287_v35 = vsel %vm132_vm0, %v2095_v29, 0.0  ;;  %v2109_v38 = vadd.f32 %v2064_v10, %v194_v36  ;;  %v727_v36 = vld [vmem:[%s2844_s1 + $0x8] sm:$0xff] }
  0xdf   :  { %279 = vadd.xlane.f32.xlu1 %v278_v24  ;;  %255 = vadd.xlane.f32.xlu0 %v254_v21  ;;  %v335_v37 = vsel %vm132_vm0, %v319_v33, 0.0  ;;  %v330_v40 = vmul.f32 %v2095_v29, %v2095_v29  ;;  %v359_v43 = vsel %vm132_vm0, %v327_v41, 0.0  ;;  %v1765_v45 = vpop.f32.mrf.mxu0  ;;  %v322_v49 = vmul.f32 %v2091_v27, %v2091_v27  ;;  %v1773_v50 = vpop.f32.mrf.mxu1 }
  0xe0   :  { %v281_v39 = vsel %vm132_vm0, %v2103_v34, 0.0  ;;  %v320_v44 = vmul.f32 %v2109_v38, %v2109_v38  ;;  %v257_v47 = vsel %vm132_vm0, %v2109_v38, 0.0  ;;  %v328_v48 = vmul.f32 %v2103_v34, %v2103_v34 }
  0xe1   :  { %v368_v42 = vsel %vm132_vm0, %v330_v40, 0.0  ;;  %v2129_v51 = vadd.f32 %v1773_v50, %v2064_v10  ;;  %v2132_v52 = vadd.f32 %v1765_v45, %v2064_v10  ;;  %v207_v53 = vpop.f32.mrf.mxu0  ;;  %v344_v55 = vsel %vm132_vm0, %v322_v49, 0.0  ;;  %v239_v59 = vpop.f32.mrf.mxu1 }
  0xe2   :  { %v338_v46 = vsel %vm132_vm0, %v320_v44, 0.0  ;;  %v362_v54 = vsel %vm132_vm0, %v328_v48, 0.0  ;;  %v2137_v56 = vadd.f32 %v2064_v10, %v207_v53  ;;  %v2144_v60 = vadd.f32 %v2064_v10, %v239_v59 }
  0xe3   :  { %366 = vadd.xlane.f32.xlu1 %v365_v30  ;;  %342 = vadd.xlane.f32.xlu0 %v341_v28  ;;  %v296_v57 = vsel %vm132_vm0, %v2129_v51, 0.0  ;;  %v272_v58 = vsel %vm132_vm0, %v2132_v52, 0.0  ;;  %v325_v62 = vmul.f32 %v2132_v52, %v2132_v52  ;;  %v333_v0 = vmul.f32 %v2129_v51, %v2129_v51  ;;  %v1766_v3 = vpop.f32.mrf.mxu0  ;;  %v1774_v6 = vpop.f32.mrf.mxu1 }
  0xe4   :  { %v266_v61 = vsel %vm132_vm0, %v2137_v56, 0.0  ;;  %v290_v63 = vsel %vm132_vm0, %v2144_v60, 0.0  ;;  %v323_v2 = vmul.f32 %v2137_v56, %v2137_v56  ;;  %v331_v5 = vmul.f32 %v2144_v60, %v2144_v60 }
  0xe5   :  { %v353_v1 = vsel %vm132_vm0, %v325_v62, 0.0  ;;  %v377_v4 = vsel %vm132_vm0, %v333_v0, 0.0  ;;  %v2161_v7 = vadd.f32 %v1766_v3, %v2064_v10  ;;  %v210_v9 = vpop.f32.mrf.mxu0  ;;  %v2165_v11 = vadd.f32 %v1774_v6, %v2064_v10  ;;  %v242_v15 = vpop.f32.mrf.mxu1 }
  0xe6   :  { %v347_v8 = vsel %vm132_vm0, %v323_v2, 0.0  ;;  %v371_v12 = vsel %vm132_vm0, %v331_v5, 0.0  ;;  %v2169_v16 = vadd.f32 %v2064_v10, %v210_v9  ;;  %v2174_v19 = vadd.f32 %v2064_v10, %v242_v15 }
  0xe7   :  { %288 = vadd.xlane.f32.xlu1 %v287_v35  ;;  %264 = vadd.xlane.f32.xlu0 %v263_v32  ;;  %v275_v18 = vsel %vm132_vm0, %v2161_v7, 0.0  ;;  %v299_v21 = vsel %vm132_vm0, %v2165_v11, 0.0  ;;  %v334_v25 = vmul.f32 %v2165_v11, %v2165_v11  ;;  %v326_v26 = vmul.f32 %v2161_v7, %v2161_v7  ;;  %v726_v32 = vld [vmem:[%s2844_s1] sm:$0xff] }
  0xe8   :  { %v269_v22 = vsel %vm132_vm0, %v2169_v16, 0.0  ;;  %v324_v23 = vmul.f32 %v2169_v16, %v2169_v16  ;;  %v293_v24 = vsel %vm132_vm0, %v2174_v19, 0.0  ;;  %v734_v31 = vlaneseq }
  0xe9   :  { %v380_v28 = vsel %vm132_vm0, %v334_v25, 0.0  ;;  %v356_v30 = vsel %vm132_vm0, %v326_v26, 0.0  ;;  %v1742_v33 = vadd.f32 -1.0, %v726_v32  ;;  %v1743_v40 = vadd.f32 -1.0, %v727_v36 }
  0xea   :  { %v350_v10 = vsel %vm132_vm0, %v324_v23, 0.0  ;;  %v2195_v35 = vshrl.u32 %v734_v31, 7  ;;  %v332_v59 = vmul.f32 %v2174_v19, %v2174_v19 }
  0xeb   :  { %282 = vadd.xlane.f32.xlu1 %v281_v39  ;;  %336 = vadd.xlane.f32.xlu0 %v335_v37  ;;  %v2200_v37 = vmul.f32 1e+30, %v1742_v33 }
  0xec   :  { %v2203_v39 = vsub.s32 1, %v2195_v35  ;;  %v2222_v48 = vsub.s32 3, %v2195_v35  ;;  %v2227_v50 = vsub.s32 4, %v2195_v35 }
  0xee   :  { %v744_v41 = vrot.slane %v2200_v37, %v2203_v39  ;;  %v758_v49 = vrot.slane %v2200_v37, %v2222_v48  ;;  %v765_v53 = vrot.slane %v2200_v37, %v2227_v50 }
  0xef   :  { %369 = vadd.xlane.f32.xlu1 %v368_v42  ;;  %360 = vadd.xlane.f32.xlu0 %v359_v43  ;;  %v2207_v42 = vmul.f32 1e+30, %v1743_v40  ;;  %v2210_v43 = vsub.s32 0, %v2195_v35 }
  0xf1   :  { %v793_v44 = vrot.slane %v2207_v42, %v2210_v43  ;;  %v737_v45 = vrot.slane %v2200_v37, %v2210_v43  ;;  %v800_v62 = vrot.slane %v2207_v42, %v2203_v39  ;;  %v814_v0 = vrot.slane %v2207_v42, %v2222_v48 }
  0xf2   :  { %v821_v3 = vrot.slane %v2207_v42, %v2227_v50 }
  0xf3   :  { %339 = vadd.xlane.f32.xlu1 %v338_v46  ;;  %258 = vadd.xlane.f32.xlu0 %v257_v47  ;;  %v2217_v46 = vsub.s32 2, %v2195_v35 }
  0xf5   :  { %v751_v47 = vrot.slane %v2200_v37, %v2217_v46 }
  0xf7   :  { %363 = vadd.xlane.f32.xlu1 %v362_v54  ;;  %345 = vadd.xlane.f32.xlu0 %v344_v55  ;;  %v2232_v54 = vsub.s32 5, %v2195_v35 }
  0xf9   :  { %v772_v55 = vrot.slane %v2200_v37, %v2232_v54  ;;  %v828_v9 = vrot.slane %v2207_v42, %v2232_v54 }
  0xfb   :  { %297 = vadd.xlane.f32.xlu1 %v296_v57  ;;  %273 = vadd.xlane.f32.xlu0 %v272_v58  ;;  %v2237_v57 = vsub.s32 6, %v2195_v35 }
  0xfd   :  { %v779_v58 = vrot.slane %v2200_v37, %v2237_v57 }
  0xff   :  { %291 = vadd.xlane.f32.xlu1 %v290_v63  ;;  %267 = vadd.xlane.f32.xlu0 %v266_v61  ;;  %v374_v61 = vsel %vm132_vm0, %v332_v59, 0.0  ;;  %v807_v63 = vrot.slane %v2207_v42, %v2217_v46 }
 0x103   :  { %378 = vadd.xlane.f32.xlu1 %v377_v4  ;;  %354 = vadd.xlane.f32.xlu0 %v353_v1 }
 0x107   :  { %372 = vadd.xlane.f32.xlu1 %v371_v12  ;;  %348 = vadd.xlane.f32.xlu0 %v347_v8 }
 0x10b   :  { %300 = vadd.xlane.f32.xlu1 %v299_v21  ;;  %276 = vadd.xlane.f32.xlu0 %v275_v18 }
 0x10f   :  { %294 = vadd.xlane.f32.xlu1 %v293_v24  ;;  %270 = vadd.xlane.f32.xlu0 %v269_v22  ;;  %v835_v24 = vrot.slane %v2207_v42, %v2237_v57 }
 0x113   :  { %381 = vadd.xlane.f32.xlu1 %v380_v28  ;;  %351 = vadd.xlane.f32.xlu0 %v350_v10 }
 0x117   :  { %357 = vadd.xlane.f32.xlu0 %v356_v30 }
 0x124   :  { %746 = vbcast.lane.b32.xlu1 %v744_v41, 256 }
 0x128   :  { %795 = vbcast.lane.b32.xlu1 %v793_v44, 256 }
 0x12d   :  { %739 = vbcast.lane.b32.xlu0 %v737_v45, 256 }
 0x131   :  { %753 = vbcast.lane.b32.xlu0 %v751_v47, 256 }
 0x135   :  { %760 = vbcast.lane.b32.xlu0 %v758_v49, 256 }
 0x139   :  { %767 = vbcast.lane.b32.xlu0 %v765_v53, 256 }
 0x13d   :  { %774 = vbcast.lane.b32.xlu0 %v772_v55, 256 }
 0x141   :  { %781 = vbcast.lane.b32.xlu0 %v779_v58, 256 }
 0x14c   :  { %375 = vadd.xlane.f32.xlu1 %v374_v61 }
 0x15d   :  { %802 = vbcast.lane.b32.xlu1 %v800_v62, 256 }
 0x161   :  { %809 = vbcast.lane.b32.xlu1 %v807_v63, 256 }
 0x164   :  { %v286_v1 = vpop.xlane.xlu1 %285  ;;  %v262_v2 = vpop.xlane.xlu0 %261 }
 0x165   :  { %816 = vbcast.lane.b32.xlu1 %v814_v0, 256  ;;  %v2252_v6 = vmul.f32 0.03125, %v286_v1  ;;  %v2254_v8 = vmul.f32 0.03125, %v262_v2 }
 0x167   :  { %v401_v12 = vmul.f32 %v2254_v8, %v2254_v8  ;;  %v409_v21 = vmul.f32 %v2252_v6, %v2252_v6 }
 0x168   :  { %v280_v4 = vpop.xlane.xlu1 %279  ;;  %v256_v5 = vpop.xlane.xlu0 %255 }
 0x169   :  { %823 = vbcast.lane.b32.xlu1 %v821_v3, 256  ;;  %v2264_v30 = vmul.f32 0.03125, %v256_v5  ;;  %v2268_v44 = vmul.f32 0.03125, %v280_v4 }
 0x16b   :  { %v399_v36 = vmul.f32 %v2264_v30, %v2264_v30  ;;  %v407_v58 = vmul.f32 %v2268_v44, %v2268_v44 }
 0x16c   :  { %v367_v15 = vpop.xlane.xlu1 %366  ;;  %v343_v18 = vpop.xlane.xlu0 %342 }
 0x16d   :  { %v393_v22 = vmul.f32 0.03125, %v367_v15  ;;  %v385_v23 = vmul.f32 0.03125, %v343_v18  ;;  %830 = vbcast.lane.b32.xlu1 %v828_v9, 256 }
 0x16f   :  { %v425_v25 = vsub.f32 %v393_v22, %v409_v21  ;;  %v417_v10 = vsub.f32 %v385_v23, %v401_v12 }
 0x170   :  { %v289_v26 = vpop.xlane.xlu1 %288  ;;  %v265_v28 = vpop.xlane.xlu0 %264 }
 0x171   :  { %v441_v32 = vmax.f32 %v425_v25, 0.0  ;;  %v433_v33 = vmax.f32 %v417_v10, 0.0  ;;  %837 = vbcast.lane.b32.xlu1 %v835_v24, 256  ;;  %v2270_v49 = vmul.f32 0.03125, %v289_v26  ;;  %v2278_v21 = vmul.f32 0.03125, %v265_v28 }
 0x172   :  { %v457_v25 = vsub.f32 %v2070_v14, %v2252_v6 }
 0x173   :  { %v473_v40 = vadd.f32 1e-05, %v441_v32  ;;  %v465_v41 = vadd.f32 1e-05, %v433_v33  ;;  %v410_v62 = vmul.f32 %v2270_v49, %v2270_v49  ;;  %v402_v10 = vmul.f32 %v2278_v21, %v2278_v21 }
 0x174   :  { %v283_v45 = vpop.xlane.xlu1 %282  ;;  %v337_v47 = vpop.xlane.xlu0 %336 }
 0x175   :  { %1804 = vrsqrt.f32 %v473_v40  ;;  %v383_v53 = vmul.f32 0.03125, %v337_v47  ;;  %v2276_v12 = vmul.f32 0.03125, %v283_v45  ;;  %v449_v47 = vsub.f32 %v2067_v13, %v2254_v8  ;;  %v2300_v13 = vld [vmem:[%s2848_s5] ss:$0 sm:$0xff] }
 0x176   :  { %1806 = vrsqrt.f32 %v465_v41 }
 0x177   :  { %v415_v55 = vsub.f32 %v383_v53, %v399_v36  ;;  %v408_v28 = vmul.f32 %v2276_v12, %v2276_v12  ;;  %v2295_v53 = vld [vmem:[%s2847_s4] ss:$0 sm:$0xff] }
 0x178   :  { %v370_v59 = vpop.xlane.xlu1 %369  ;;  %v361_v61 = vpop.xlane.xlu0 %360 }
 0x179   :  { %v431_v63 = vmax.f32 %v415_v55, 0.0  ;;  %v394_v0 = vmul.f32 0.03125, %v370_v59  ;;  %v391_v1 = vmul.f32 0.03125, %v361_v61 }
 0x17b   :  { %v463_v2 = vadd.f32 1e-05, %v431_v63  ;;  %v426_v3 = vsub.f32 %v394_v0, %v410_v62  ;;  %v423_v4 = vsub.f32 %v391_v1, %v407_v58 }
 0x17c   :  { %v340_v5 = vpop.xlane.xlu1 %339  ;;  %v259_v9 = vpop.xlane.xlu0 %258 }
 0x17d   :  { %1808 = vrsqrt.f32 %v463_v2  ;;  %v442_v15 = vmax.f32 %v426_v3, 0.0  ;;  %v439_v18 = vmax.f32 %v423_v4, 0.0  ;;  %v2280_v22 = vmul.f32 0.03125, %v259_v9 }
 0x17e   :  { %v384_v26 = vmul.f32 0.03125, %v340_v5 }
 0x17f   :  { %v474_v23 = vadd.f32 1e-05, %v442_v15  ;;  %v471_v24 = vadd.f32 1e-05, %v439_v18  ;;  %v400_v32 = vmul.f32 %v2280_v22, %v2280_v22 }
 0x180   :  { %v364_v33 = vpop.xlane.xlu1 %363  ;;  %v346_v36 = vpop.xlane.xlu0 %345 }
 0x181   :  { %1810 = vrsqrt.f32 %v474_v23  ;;  %v392_v40 = vmul.f32 0.03125, %v364_v33  ;;  %v386_v41 = vmul.f32 0.03125, %v346_v36  ;;  %v416_v14 = vsub.f32 %v384_v26, %v400_v32 }
 0x182   :  { %v1805_v45 = vpop.eup %1804  ;;  %1812 = vrsqrt.f32 %v471_v24  ;;  %v447_v32 = vsub.f32 %v2080_v20, %v2264_v30  ;;  %v458_v36 = vsub.f32 %v2095_v29, %v2270_v49 }
 0x183   :  { %v1807_v6 = vpop.eup %1806  ;;  %v424_v55 = vsub.f32 %v392_v40, %v408_v28  ;;  %v418_v58 = vsub.f32 %v386_v41, %v402_v10  ;;  %v505_v59 = vmul.f32 %v1805_v45, %v457_v25  ;;  %v432_v61 = vmax.f32 %v416_v14, 0.0 }
 0x184   :  { %v298_v62 = vpop.xlane.xlu1 %297  ;;  %v274_v63 = vpop.xlane.xlu0 %273  ;;  %v497_v0 = vmul.f32 %v1807_v6, %v449_v47 }
 0x185   :  { %v440_v1 = vmax.f32 %v424_v55, 0.0  ;;  %v434_v2 = vmax.f32 %v418_v58, 0.0  ;;  %v464_v8 = vadd.f32 1e-05, %v432_v61  ;;  %v528_v3 = vmul.f32 %v2295_v53, %v505_v59 }
 0x186   :  { %v520_v4 = vmul.f32 %v2295_v53, %v497_v0  ;;  %v2304_v9 = vmul.f32 0.03125, %v298_v62  ;;  %v2309_v25 = vmul.f32 0.03125, %v274_v63  ;;  %v455_v55 = vsub.f32 %v2073_v17, %v2268_v44 }
 0x187   :  { %v472_v5 = vadd.f32 1e-05, %v440_v1  ;;  %1814 = vrsqrt.f32 %v464_v8  ;;  %v2307_v23 = vadd.f32 %v2300_v13, %v528_v3  ;;  %v466_v24 = vadd.f32 1e-05, %v434_v2 }
 0x188   :  { %v292_v15 = vpop.xlane.xlu1 %291  ;;  %v268_v18 = vpop.xlane.xlu0 %267  ;;  %v2312_v10 = vadd.f32 %v2300_v13, %v520_v4  ;;  %v413_v28 = vmul.f32 %v2304_v9, %v2304_v9  ;;  %v405_v40 = vmul.f32 %v2309_v25, %v2309_v25 }
 0x189   :  { %v583_v33 = vmul.f32 0.70710677, %v2307_v23  ;;  %1816 = vrsqrt.f32 %v472_v5  ;;  %v2323_v41 = vmul.f32 0.03125, %v292_v15  ;;  %v2326_v30 = vmul.f32 0.03125, %v268_v18 }
 0x18a   :  { %v1809_v26 = vpop.eup %1808  ;;  %v575_v14 = vmul.f32 0.70710677, %v2312_v10 }
 0x18b   :  { %1818 = verf.f32 %v583_v33  ;;  %v495_v20 = vmul.f32 %v1809_v26, %v447_v32  ;;  %v403_v61 = vmul.f32 %v2326_v30, %v2326_v30  ;;  %v411_v1 = vmul.f32 %v2323_v41, %v2323_v41 }
 0x18c   :  { %v379_v45 = vpop.xlane.xlu1 %378  ;;  %v355_v47 = vpop.xlane.xlu0 %354  ;;  %1820 = vrsqrt.f32 %v466_v24 }
 0x18d   :  { %v397_v6 = vmul.f32 0.03125, %v379_v45  ;;  %v389_v29 = vmul.f32 0.03125, %v355_v47  ;;  %1822 = verf.f32 %v575_v14  ;;  %v518_v58 = vmul.f32 %v2295_v53, %v495_v20 }
 0x18e   :  { %v1811_v49 = vpop.eup %1810 }
 0x18f   :  { %v1813_v59 = vpop.eup %1812  ;;  %v429_v62 = vsub.f32 %v397_v6, %v413_v28  ;;  %v421_v63 = vsub.f32 %v389_v29, %v405_v40  ;;  %v506_v0 = vmul.f32 %v1811_v49, %v458_v36  ;;  %v2336_v3 = vadd.f32 %v2300_v13, %v518_v58 }
 0x190   :  { %v373_v2 = vpop.xlane.xlu1 %372  ;;  %v349_v8 = vpop.xlane.xlu0 %348  ;;  %v503_v4 = vmul.f32 %v1813_v59, %v455_v55  ;;  %v448_v40 = vsub.f32 %v2109_v38, %v2280_v22  ;;  %v450_v38 = vsub.f32 %v2091_v27, %v2278_v21 }
 0x191   :  { %v445_v17 = vmax.f32 %v429_v62, 0.0  ;;  %v437_v44 = vmax.f32 %v421_v63, 0.0  ;;  %v395_v5 = vmul.f32 0.03125, %v373_v2  ;;  %v387_v15 = vmul.f32 0.03125, %v349_v8 }
 0x192   :  { %v573_v18 = vmul.f32 0.70710677, %v2336_v3  ;;  %v529_v24 = vmul.f32 %v2295_v53, %v506_v0  ;;  %v526_v26 = vmul.f32 %v2295_v53, %v503_v4  ;;  %v456_v8 = vsub.f32 %v2103_v34, %v2276_v12  ;;  %v2375_v12 = vld [vmem:[%s2849_s6] ss:$0 sm:$0xff] }
 0x193   :  { %v477_v32 = vadd.f32 1e-05, %v445_v17  ;;  %v469_v33 = vadd.f32 1e-05, %v437_v44  ;;  %v427_v36 = vsub.f32 %v395_v5, %v411_v1  ;;  %v419_v28 = vsub.f32 %v387_v15, %v403_v61 }
 0x194   :  { %v301_v45 = vpop.xlane.xlu1 %300  ;;  %v277_v47 = vpop.xlane.xlu0 %276  ;;  %1824 = verf.f32 %v573_v18  ;;  %v2344_v14 = vadd.f32 %v2300_v13, %v529_v24  ;;  %v2347_v55 = vadd.f32 %v2300_v13, %v526_v26  ;;  %v567_v17 = vmul.f32 0.5, %v2307_v23 }
 0x195   :  { %v1815_v20 = vpop.eup %1814  ;;  %1826 = vrsqrt.f32 %v477_v32  ;;  %v443_v6 = vmax.f32 %v427_v36, 0.0  ;;  %v435_v29 = vmax.f32 %v419_v28, 0.0  ;;  %v2352_v62 = vmul.f32 0.03125, %v301_v45 }
 0x196   :  { %v496_v49 = vmul.f32 %v1815_v20, %v448_v40  ;;  %1828 = vrsqrt.f32 %v469_v33  ;;  %v1817_v61 = vpop.eup %1816  ;;  %v584_v1 = vmul.f32 0.70710677, %v2344_v14  ;;  %v581_v21 = vmul.f32 0.70710677, %v2347_v55 }
 0x197   :  { %v475_v58 = vadd.f32 1e-05, %v443_v6  ;;  %v467_v59 = vadd.f32 1e-05, %v435_v29  ;;  %v461_v18 = vsub.f32 %v2129_v51, %v2304_v9  ;;  %v2368_v24 = vmul.f32 0.03125, %v277_v47 }
 0x198   :  { %v519_v22 = vmul.f32 %v2295_v53, %v496_v49  ;;  %v2354_v63 = vpop.xlane.xlu1 %294  ;;  %v271_v0 = vpop.xlane.xlu0 %270  ;;  %v559_v23 = vmul.f32 0.5, %v2312_v10  ;;  %v414_v26 = vmul.f32 %v2352_v62, %v2352_v62  ;;  %v504_v6 = vmul.f32 %v1817_v61, %v456_v8 }
 0x199   :  { %v1819_v2 = vpop.eup %1818  ;;  %1830 = vrsqrt.f32 %v475_v58  ;;  %v2359_v4 = vmul.f32 0.03125, %v271_v0  ;;  %v406_v10 = vmul.f32 %v2368_v24, %v2368_v24 }
 0x19a   :  { %v1821_v44 = vpop.eup %1820  ;;  %1832 = vrsqrt.f32 %v467_v59  ;;  %v615_v27 = vadd.f32 1.0, %v1819_v2  ;;  %v2364_v5 = vadd.f32 %v2300_v13, %v519_v22 }
 0x19b   :  { %v1823_v15 = vpop.eup %1822  ;;  %v404_v34 = vmul.f32 %v2359_v4, %v2359_v4  ;;  %1834 = verf.f32 %v584_v1  ;;  %v498_v20 = vmul.f32 %v1821_v44, %v450_v38  ;;  %v527_v1 = vmul.f32 %v2295_v53, %v504_v6 }
 0x19c   :  { %v382_v32 = vpop.xlane.xlu1 %381  ;;  %v352_v33 = vpop.xlane.xlu0 %351  ;;  %v631_v36 = vmul.f32 %v615_v27, %v567_v17  ;;  %v607_v28 = vadd.f32 1.0, %v1823_v15  ;;  %1836 = verf.f32 %v581_v21  ;;  %v574_v40 = vmul.f32 0.70710677, %v2364_v5 }
 0x19d   :  { %v398_v51 = vmul.f32 0.03125, %v382_v32  ;;  %v388_v9 = vmul.f32 0.03125, %v352_v33  ;;  %v521_v0 = vmul.f32 %v2295_v53, %v498_v20  ;;  %v557_v38 = vmul.f32 0.5, %v2336_v3 }
 0x19e   :  { %v654_v45 = vmul.f32 %v2375_v12, %v631_v36  ;;  %v623_v47 = vmul.f32 %v607_v28, %v559_v23  ;;  %1838 = verf.f32 %v574_v40  ;;  %v453_v28 = vsub.f32 %v2132_v52, %v2309_v25 }
 0x19f   :  { %v430_v29 = vsub.f32 %v398_v51, %v414_v26  ;;  %v420_v49 = vsub.f32 %v388_v9, %v404_v34  ;;  %v2391_v15 = vadd.f32 %v2300_v13, %v521_v0  ;;  %v2394_v34 = vadd.f32 %v2300_v13, %v527_v1 }
 0x1a0   :  { %v690_v58 = vsel %vm132_vm0, %v654_v45, 0.0  ;;  %v646_v59 = vmul.f32 %v2375_v12, %v623_v47  ;;  %v358_v22 = vpop.xlane.xlu0 %357  ;;  %v459_v3 = vsub.f32 %v2144_v60, %v2323_v41  ;;  %v451_v6 = vsub.f32 %v2137_v56, %v2326_v30 }
 0x1a1   :  { %v1825_v2 = vpop.eup %1824  ;;  %v446_v17 = vmax.f32 %v430_v29, 0.0  ;;  %v436_v27 = vmax.f32 %v420_v49, 0.0  ;;  %691 = vadd.xlane.f32.xlu1 %v690_v58  ;;  %v390_v61 = vmul.f32 0.03125, %v358_v22  ;;  %v576_v9 = vmul.f32 0.70710677, %v2391_v15 }
 0x1a2   :  { %v1827_v8 = vpop.eup %1826  ;;  %v666_v44 = vsel %vm132_vm0, %v646_v59, 0.0  ;;  %v605_v21 = vadd.f32 1.0, %v1825_v2  ;;  %v582_v45 = vmul.f32 0.70710677, %v2394_v34  ;;  %v568_v0 = vmul.f32 0.5, %v2344_v14 }
 0x1a3   :  { %v1829_v23 = vpop.eup %1828  ;;  %v478_v26 = vadd.f32 1e-05, %v446_v17  ;;  %v468_v32 = vadd.f32 1e-05, %v436_v27  ;;  %667 = vadd.xlane.f32.xlu0 %v666_v44  ;;  %v422_v33 = vsub.f32 %v390_v61, %v406_v10  ;;  %v509_v36 = vmul.f32 %v1827_v8, %v461_v18 }
 0x1a4   :  { %v621_v51 = vmul.f32 %v605_v21, %v557_v38  ;;  %v501_v52 = vmul.f32 %v1829_v23, %v453_v28  ;;  %v565_v27 = vmul.f32 0.5, %v2347_v55 }
 0x1a5   :  { %1840 = vrsqrt.f32 %v478_v26  ;;  %v438_v40 = vmax.f32 %v422_v33, 0.0  ;;  %v532_v47 = vmul.f32 %v2295_v53, %v509_v36  ;;  %v558_v26 = vmul.f32 0.5, %v2364_v5 }
 0x1a6   :  { %v1831_v20 = vpop.eup %1830  ;;  %1842 = vrsqrt.f32 %v468_v32  ;;  %v644_v18 = vmul.f32 %v2375_v12, %v621_v51  ;;  %v524_v49 = vmul.f32 %v2295_v53, %v501_v52  ;;  %v462_v5 = vsub.f32 %v2165_v11, %v2352_v62 }
 0x1a7   :  { %v1833_v25 = vpop.eup %1832  ;;  %v470_v10 = vadd.f32 1e-05, %v438_v40  ;;  %1844 = verf.f32 %v576_v9  ;;  %v2407_v60 = vadd.f32 %v2300_v13, %v532_v47  ;;  %v507_v41 = vmul.f32 %v1831_v20, %v459_v3 }
 0x1a8   :  { %v660_v29 = vsel %vm132_vm0, %v644_v18, 0.0  ;;  %1846 = verf.f32 %v582_v45  ;;  %v499_v58 = vmul.f32 %v1833_v25, %v451_v6  ;;  %v1835_v59 = vpop.eup %1834  ;;  %v2415_v2 = vadd.f32 %v2300_v13, %v524_v49 }
 0x1a9   :  { %1848 = vrsqrt.f32 %v470_v10  ;;  %661 = vadd.xlane.f32.xlu0 %v660_v29  ;;  %v587_v56 = vmul.f32 0.70710677, %v2407_v60  ;;  %v530_v30 = vmul.f32 %v2295_v53, %v507_v41  ;;  %v1837_v22 = vpop.eup %1836  ;;  %v616_v1 = vadd.f32 1.0, %v1835_v59 }
 0x1aa   :  { %v522_v17 = vmul.f32 %v2295_v53, %v499_v58  ;;  %v613_v61 = vadd.f32 1.0, %v1837_v22  ;;  %v579_v21 = vmul.f32 0.70710677, %v2415_v2  ;;  %v1987_v9 = vmov 0  }
 0x1ab   :  { %1850 = verf.f32 %v587_v56  ;;  %v2420_v38 = vadd.f32 %v2300_v13, %v530_v30  ;;  %v1839_v8 = vpop.eup %1838  ;;  %v632_v44 = vmul.f32 %v616_v1, %v568_v0  ;;  %1785 = vset.pattern.permute.xlu0 %v1987_v9  ;;  %1784 = vset.pattern.permute.xlu1 %v1987_v9  ;;  %v452_v20 = vsub.f32 %v2169_v16, %v2359_v4 }
 0x1ac   :  { %v2424_v23 = vadd.f32 %v2300_v13, %v522_v17  ;;  %v629_v14 = vmul.f32 %v613_v61, %v565_v27  ;;  %v606_v32 = vadd.f32 1.0, %v1839_v8  ;;  %1852 = verf.f32 %v579_v21 }
 0x1ad   :  { %v585_v33 = vmul.f32 0.70710677, %v2420_v38  ;;  %v655_v55 = vmul.f32 %v2375_v12, %v632_v44  ;;  %v454_v11 = vsub.f32 %v2161_v7, %v2368_v24  ;;  %v560_v62 = vmul.f32 0.5, %v2391_v15 }
 0x1ae   :  { %v577_v36 = vmul.f32 0.70710677, %v2424_v23  ;;  %v652_v28 = vmul.f32 %v2375_v12, %v629_v14  ;;  %v622_v3 = vmul.f32 %v606_v32, %v558_v26  ;;  %v566_v16 = vmul.f32 0.5, %v2394_v34 }
 0x1af   :  { %1854 = verf.f32 %v585_v33  ;;  %v693_v51 = vsel %vm132_vm0, %v655_v55, 0.0  ;;  %v571_v15 = vmul.f32 0.5, %v2407_v60  ;;  %v563_v26 = vmul.f32 0.5, %v2415_v2 }
 0x1b0   :  { %1856 = verf.f32 %v577_v36  ;;  %694 = vadd.xlane.f32.xlu1 %v693_v51  ;;  %v684_v40 = vsel %vm132_vm0, %v652_v28, 0.0  ;;  %v645_v45 = vmul.f32 %v2375_v12, %v622_v3  ;;  %v569_v3 = vmul.f32 0.5, %v2420_v38 }
 0x1b1   :  { %685 = vadd.xlane.f32.xlu0 %v684_v40 }
 0x1b2   :  { %v1841_v47 = vpop.eup %1840  ;;  %v663_v18 = vsel %vm132_vm0, %v645_v45, 0.0 }
 0x1b3   :  { %v1843_v6 = vpop.eup %1842  ;;  %v510_v52 = vmul.f32 %v1841_v47, %v462_v5  ;;  %v561_v5 = vmul.f32 0.5, %v2424_v23 }
 0x1b4   :  { %v1845_v25 = vpop.eup %1844  ;;  %v500_v10 = vmul.f32 %v1843_v6, %v452_v20  ;;  %664 = vadd.xlane.f32.xlu1 %v663_v18 }
 0x1b5   :  { %v1847_v41 = vpop.eup %1846  ;;  %v608_v29 = vadd.f32 1.0, %v1845_v25  ;;  %v533_v49 = vmul.f32 %v2295_v53, %v510_v52 }
 0x1b6   :  { %v1849_v58 = vpop.eup %1848  ;;  %v614_v4 = vadd.f32 1.0, %v1847_v41  ;;  %v523_v59 = vmul.f32 %v2295_v53, %v500_v10 }
 0x1b7   :  { %v624_v56 = vmul.f32 %v608_v29, %v560_v62  ;;  %v556_v30 = vadd.f32 %v2300_v13, %v533_v49  ;;  %v502_v22 = vmul.f32 %v1849_v58, %v454_v11  ;;  %v2465_v29 = vpop.permute.xlu1 %746 }
 0x1b8   :  { %v1851_v0 = vpop.eup %1850  ;;  %v630_v1 = vmul.f32 %v614_v4, %v566_v16  ;;  %v546_v7 = vadd.f32 %v2300_v13, %v523_v59 }
 0x1b9   :  { %v647_v24 = vmul.f32 %v2375_v12, %v624_v56  ;;  %v619_v17 = vadd.f32 1.0, %v1851_v0  ;;  %v588_v27 = vmul.f32 0.70710677, %v556_v30  ;;  %v525_v34 = vmul.f32 %v2295_v53, %v502_v22  ;;  %v1853_v44 = vpop.eup %1852 }
 0x1ba   :  { %v653_v61 = vmul.f32 %v2375_v12, %v630_v1  ;;  %v578_v8 = vmul.f32 0.70710677, %v546_v7  ;;  %v611_v55 = vadd.f32 1.0, %v1853_v44  ;;  %v572_v11 = vmul.f32 0.5, %v556_v30 }
 0x1bb   :  { %v669_v21 = vsel %vm132_vm0, %v647_v24, 0.0  ;;  %v635_v14 = vmul.f32 %v619_v17, %v571_v15  ;;  %1858 = verf.f32 %v588_v27  ;;  %v548_v60 = vadd.f32 %v2300_v13, %v525_v34  ;;  %v2469_v15 = vpop.permute.xlu1 %795 }
 0x1bc   :  { %v1855_v32 = vpop.eup %1854  ;;  %670 = vadd.xlane.f32.xlu0 %v669_v21  ;;  %v687_v33 = vsel %vm132_vm0, %v653_v61, 0.0  ;;  %1860 = verf.f32 %v578_v8  ;;  %v627_v9 = vmul.f32 %v611_v55, %v563_v26  ;;  %v562_v22 = vmul.f32 0.5, %v546_v7 }
 0x1bd   :  { %v1857_v36 = vpop.eup %1856  ;;  %688 = vadd.xlane.f32.xlu1 %v687_v33  ;;  %v658_v28 = vmul.f32 %v2375_v12, %v635_v14  ;;  %v617_v51 = vadd.f32 1.0, %v1855_v32  ;;  %v580_v40 = vmul.f32 0.70710677, %v548_v60  ;;  %v564_v59 = vmul.f32 0.5, %v548_v60 }
 0x1be   :  { %v609_v2 = vadd.f32 1.0, %v1857_v36  ;;  %v650_v20 = vmul.f32 %v2375_v12, %v627_v9  ;;  %v316_v30 = vmul.f32 0.03125, %v2354_v63  ;;  %v2477_v32 = vsub.s32 7, %v2195_v35 }
 0x1bf   :  { %v702_v45 = vsel %vm132_vm0, %v658_v28, 0.0  ;;  %v633_v47 = vmul.f32 %v617_v51, %v569_v3  ;;  %1862 = verf.f32 %v580_v40 }
 0x1c0   :  { %v625_v6 = vmul.f32 %v609_v2, %v561_v5  ;;  %v678_v52 = vsel %vm132_vm0, %v650_v20, 0.0  ;;  %v412_v8 = vmul.f32 %v316_v30, %v316_v30  ;;  %v460_v63 = vsub.f32 %v2174_v19, %v316_v30 }
 0x1c1   :  { %703 = vadd.xlane.f32.xlu1 %v702_v45  ;;  %v656_v18 = vmul.f32 %v2375_v12, %v633_v47  ;;  %679 = vadd.xlane.f32.xlu0 %v678_v52  ;;  %v786_v55 = vrot.slane %v2200_v37, %v2477_v32  ;;  %v740_v47 = vpop.permute.xlu0 %739 }
 0x1c2   :  { %v648_v38 = vmul.f32 %v2375_v12, %v625_v6 }
 0x1c3   :  { %v696_v25 = vsel %vm132_vm0, %v656_v18, 0.0 }
 0x1c4   :  { %v672_v23 = vsel %vm132_vm0, %v648_v38, 0.0 }
 0x1c5   :  { %697 = vadd.xlane.f32.xlu1 %v696_v25  ;;  %673 = vadd.xlane.f32.xlu0 %v672_v23  ;;  %v754_v20 = vpop.permute.xlu0 %753 }
 0x1c8   :  { %v1859_v10 = vpop.eup %1858 }
 0x1c9   :  { %v1861_v41 = vpop.eup %1860  ;;  %v620_v62 = vadd.f32 1.0, %v1859_v10  ;;  %v2493_v10 = vstv %s2851_s8 }
 0x1ca   :  { %v610_v58 = vadd.f32 1.0, %v1861_v41 }
 0x1cb   :  { %v636_v49 = vmul.f32 %v620_v62, %v572_v11 }
 0x1cc   :  { %v1863_v16 = vpop.eup %1862  ;;  %v626_v24 = vmul.f32 %v610_v58, %v562_v22 }
 0x1cd   :  { %v659_v4 = vmul.f32 %v2375_v12, %v636_v49  ;;  %v612_v56 = vadd.f32 1.0, %v1863_v16 }
 0x1ce   :  { %v649_v61 = vmul.f32 %v2375_v12, %v626_v24 }
 0x1cf   :  { %v705_v0 = vsel %vm132_vm0, %v659_v4, 0.0  ;;  %v628_v1 = vmul.f32 %v612_v56, %v564_v59 }
 0x1d0   :  { %706 = vadd.xlane.f32.xlu1 %v705_v0  ;;  %v675_v21 = vsel %vm132_vm0, %v649_v61, 0.0 }
 0x1d1   :  { %v651_v17 = vmul.f32 %v2375_v12, %v628_v1 }
 0x1d3   :  { %v681_v27 = vsel %vm132_vm0, %v651_v17, 0.0 }
 0x1d4   :  { %682 = vadd.xlane.f32.xlu0 %v681_v27 }
 0x1d5   :  { %v376_v34 = vpop.xlane.xlu1 %375 }
 0x1d6   :  { %v396_v44 = vmul.f32 0.03125, %v376_v34 }
 0x1d8   :  { %v428_v7 = vsub.f32 %v396_v44, %v412_v8  ;;  %676 = vadd.xlane.f32.xlu0 %v675_v21 }
 0x1d9   :  { %v803_v45 = vpop.permute.xlu1 %802 }
 0x1da   :  { %v444_v14 = vmax.f32 %v428_v7, 0.0 }
 0x1dc   :  { %v476_v26 = vadd.f32 1e-05, %v444_v14 }
 0x1dd   :  { %v810_v37 = vpop.permute.xlu1 %809 }
 0x1de   :  { %1864 = vrsqrt.f32 %v476_v26 }
 0x1e1   :  { %v817_v6 = vpop.permute.xlu1 %816 }
 0x1e5   :  { %v824_v18 = vpop.permute.xlu1 %823 }
 0x1e9   :  { %v2488_v38 = vpop.permute.xlu1 %830 }
 0x1eb   :  { %v1865_v33 = vpop.eup %1864 }
 0x1ec   :  { %v508_v60 = vmul.f32 %v1865_v33, %v460_v63 }
 0x1ed   :  { %v838_v23 = vpop.permute.xlu1 %837 }
 0x1ee   :  { %v531_v36 = vmul.f32 %v2295_v53, %v508_v60  ;;  %788 = vbcast.lane.b32.xlu0 %v786_v55, 256  ;;  %v761_v53 = vpop.permute.xlu0 %760 }
 0x1f0   :  { %v554_v28 = vadd.f32 %v2300_v13, %v531_v36  ;;  %v842_v13 = vrot.slane %v2207_v42, %v2477_v32 }
 0x1f2   :  { %v586_v3 = vmul.f32 0.70710677, %v554_v28  ;;  %v570_v9 = vmul.f32 0.5, %v554_v28  ;;  %v768_v52 = vpop.permute.xlu0 %767 }
 0x1f4   :  { %1866 = verf.f32 %v586_v3 }
 0x1f6   :  { %v775_v25 = vpop.permute.xlu0 %774 }
 0x201   :  { %v1867_v51 = vpop.eup %1866 }
 0x202   :  { %v618_v5 = vadd.f32 1.0, %v1867_v51 }
 0x204   :  { %v634_v2 = vmul.f32 %v618_v5, %v570_v9 }
 0x206   :  { %v657_v40 = vmul.f32 %v2375_v12, %v634_v2  ;;  %v782_v12 = vpop.permute.xlu0 %781 }
 0x208   :  { %v699_v19 = vsel %vm132_vm0, %v657_v40, 0.0 }
 0x209   :  { %700 = vadd.xlane.f32.xlu1 %v699_v19 }
 0x21a   :  { %844 = vbcast.lane.b32.xlu1 %v842_v13, 256 }
 0x22a   :  { %v692_v41 = vpop.xlane.xlu1 %691 }
 0x22b   :  { %v720_v11 = vadd.f32 %v2493_v10, %v692_v41 }
 0x22c   :  { %v668_v62 = vpop.xlane.xlu0 %667 }
 0x22d   :  { %v2496_v49 = vadd.f32 %v810_v37, %v720_v11  ;;  %v712_v42 = vadd.f32 %v2493_v10, %v668_v62  ;;  %v2563_v11 = vand.u32 127, %v734_v31 }
 0x22f   :  { %v2499_v58 = vadd.f32 %v754_v20, %v712_v42  ;;  %925 = vperm.xlu0 %1785, %v2496_v49  }
 0x231   :  { %901 = vperm.xlu1 %1784, %v2499_v58  }
 0x232   :  { %v662_v16 = vpop.xlane.xlu0 %661 }
 0x233   :  { %v710_v4 = vadd.f32 %v2493_v10, %v662_v16 }
 0x235   :  { %v2504_v59 = vadd.f32 %v740_v47, %v710_v4 }
 0x237   :  { %895 = vperm.xlu0 %1785, %v2504_v59  }
 0x239   :  { %v695_v56 = vpop.xlane.xlu1 %694 }
 0x23a   :  { %v721_v22 = vadd.f32 %v2493_v10, %v695_v56  ;;  %v686_v0 = vpop.xlane.xlu0 %685 }
 0x23b   :  { %v718_v1 = vadd.f32 %v2493_v10, %v686_v0 }
 0x23c   :  { %v2509_v24 = vadd.f32 %v817_v6, %v721_v22 }
 0x23d   :  { %v2512_v30 = vadd.f32 %v2469_v15, %v718_v1  ;;  %v665_v17 = vpop.xlane.xlu1 %664 }
 0x23e   :  { %928 = vperm.xlu0 %1785, %v2509_v24   ;;  %v711_v44 = vadd.f32 %v2493_v10, %v665_v17 }
 0x23f   :  { %919 = vperm.xlu1 %1784, %v2512_v30  }
 0x240   :  { %v2527_v26 = vadd.f32 %v2465_v29, %v711_v44 }
 0x245   :  { %v671_v27 = vpop.xlane.xlu0 %670 }
 0x246   :  { %v713_v61 = vadd.f32 %v2493_v10, %v671_v27  ;;  %v689_v34 = vpop.xlane.xlu1 %688 }
 0x247   :  { %v719_v8 = vadd.f32 %v2493_v10, %v689_v34 }
 0x248   :  { %v2519_v7 = vadd.f32 %v761_v53, %v713_v61 }
 0x249   :  { %v2521_v21 = vadd.f32 %v803_v45, %v719_v8 }
 0x24a   :  { %904 = vperm.xlu1 %1784, %v2519_v7   ;;  %v704_v15 = vpop.xlane.xlu1 %703  ;;  %v680_v63 = vpop.xlane.xlu0 %679 }
 0x24b   :  { %922 = vperm.xlu0 %1785, %v2521_v21   ;;  %v724_v14 = vadd.f32 %v2493_v10, %v704_v15  ;;  %v716_v55 = vadd.f32 %v2493_v10, %v680_v63 }
 0x24d   :  { %v2529_v33 = vadd.f32 %v838_v23, %v724_v14  ;;  %v2533_v36 = vadd.f32 %v782_v12, %v716_v55 }
 0x24e   :  { %898 = vperm.xlu1 %1784, %v2527_v26   ;;  %v698_v60 = vpop.xlane.xlu1 %697  ;;  %v674_v3 = vpop.xlane.xlu0 %673 }
 0x24f   :  { %v722_v28 = vadd.f32 %v2493_v10, %v698_v60  ;;  %937 = vperm.xlu0 %1785, %v2529_v33   ;;  %v714_v29 = vadd.f32 %v2493_v10, %v674_v3 }
 0x251   :  { %v2537_v51 = vadd.f32 %v824_v18, %v722_v28  ;;  %v2541_v9 = vadd.f32 %v768_v52, %v714_v29 }
 0x252   :  { %913 = vperm.xlu1 %1784, %v2533_v36  }
 0x253   :  { %931 = vperm.xlu0 %1785, %v2537_v51  }
 0x256   :  { %907 = vperm.xlu1 %1784, %v2541_v9  }
 0x259   :  { %v707_v20 = vpop.xlane.xlu1 %706 }
 0x25a   :  { %v725_v52 = vadd.f32 %v2493_v10, %v707_v20 }
 0x25d   :  { %v683_v5 = vpop.xlane.xlu0 %682 }
 0x25e   :  { %v717_v47 = vadd.f32 %v2493_v10, %v683_v5 }
 0x261   :  { %v677_v2 = vpop.xlane.xlu0 %676 }
 0x262   :  { %v715_v40 = vadd.f32 %v2493_v10, %v677_v2 }
 0x264   :  { %v2546_v45 = vadd.f32 %v775_v25, %v715_v40 }
 0x265   :  { %v789_v19 = vpop.permute.xlu0 %788 }
 0x266   :  { %910 = vperm.xlu1 %1784, %v2546_v45   ;;  %v2550_v37 = vadd.f32 %v789_v19, %v717_v47 }
 0x26a   :  { %916 = vperm.xlu1 %1784, %v2550_v37  }
 0x292   :  { %v701_v6 = vpop.xlane.xlu1 %700 }
 0x293   :  { %v723_v53 = vadd.f32 %v2493_v10, %v701_v6 }
 0x295   :  { %v2555_v13 = vadd.f32 %v2488_v38, %v723_v53  ;;  %v2567_v38 = vsub.s32 %v2563_v11, %v2195_v35 }
 0x296   :  { %v845_v18 = vpop.permute.xlu1 %844 }
 0x297   :  { %934 = vperm.xlu0 %1785, %v2555_v13   ;;  %v2559_v25 = vadd.f32 %v845_v18, %v725_v52 }
 0x29b   :  { %940 = vperm.xlu0 %1785, %v2559_v25  }
 0x2aa   :  { %v926_v42 = vpop.permute.xlu0 %925 }
 0x2ab   :  { %v987_v6 = vrot.slane %v926_v42, %v2567_v38 }
 0x2ac   :  { %v902_v23 = vpop.permute.xlu1 %901 }
 0x2ad   :  { %v955_v1 = vrot.slane %v902_v23, %v2567_v38 }
 0x2b2   :  { %v896_v10 = vpop.permute.xlu0 %895 }
 0x2b3   :  { %v947_v56 = vrot.slane %v896_v10, %v2567_v38 }
 0x2b9   :  { %v929_v29 = vpop.permute.xlu0 %928 }
 0x2ba   :  { %v920_v12 = vpop.permute.xlu1 %919  ;;  %v991_v52 = vrot.slane %v929_v29, %v2567_v38 }
 0x2bb   :  { %v979_v19 = vrot.slane %v920_v12, %v2567_v38 }
 0x2c5   :  { %v905_v41 = vpop.permute.xlu1 %904 }
 0x2c6   :  { %v959_v27 = vrot.slane %v905_v41, %v2567_v38  ;;  %v923_v5 = vpop.permute.xlu0 %922 }
 0x2c7   :  { %v983_v40 = vrot.slane %v923_v5, %v2567_v38 }
 0x2c9   :  { %v899_v62 = vpop.permute.xlu1 %898  ;;  %v1022_v47 = vsel %vm1008_vm1, %v983_v40, %v979_v19 }
 0x2ca   :  { %v951_v4 = vrot.slane %v899_v62, %v2567_v38  ;;  %v938_v2 = vpop.permute.xlu0 %937  ;;  %v1023_v53 = vsel %vm1010_vm2, %v987_v6, %v1022_v47 }
 0x2cb   :  { %v1024_v41 = vsel %vm1012_vm4, %v991_v52, %v1023_v53  ;;  %v1003_v10 = vrot.slane %v938_v2, %v2567_v38 }
 0x2cc   :  { %v1009_v22 = vsel %vm1008_vm1, %v951_v4, %v947_v56 }
 0x2cd   :  { %v914_v16 = vpop.permute.xlu1 %913  ;;  %v1011_v31 = vsel %vm1010_vm2, %v955_v1, %v1009_v22 }
 0x2ce   :  { %v1013_v34 = vsel %vm1012_vm4, %v959_v27, %v1011_v31  ;;  %v971_v14 = vrot.slane %v914_v16, %v2567_v38  ;;  %v932_v20 = vpop.permute.xlu0 %931 }
 0x2cf   :  { %v995_v18 = vrot.slane %v932_v20, %v2567_v38 }
 0x2d1   :  { %v908_v0 = vpop.permute.xlu1 %907  ;;  %v1025_v16 = vsel %vm1014_vm3, %v995_v18, %v1024_v41 }
 0x2d2   :  { %v963_v17 = vrot.slane %v908_v0, %v2567_v38 }
 0x2d4   :  { %v1015_v44 = vsel %vm1014_vm3, %v963_v17, %v1013_v34 }
 0x2e1   :  { %v911_v61 = vpop.permute.xlu1 %910 }
 0x2e2   :  { %v967_v8 = vrot.slane %v911_v61, %v2567_v38 }
 0x2e4   :  { %v1017_v15 = vsel %vm1016_vm5, %v967_v8, %v1015_v44 }
 0x2e5   :  { %v917_v63 = vpop.permute.xlu1 %916  ;;  %v1019_v60 = vsel %vm1018_vm6, %v971_v14, %v1017_v15 }
 0x2e6   :  { %v975_v55 = vrot.slane %v917_v63, %v2567_v38 }
 0x2e8   :  { %v1021_v28 = vsel %vm1020_vm7, %v975_v55, %v1019_v60 }
 0x2e9   :  { %v1032_v3 = vsel %vm1031_vm8, %v1021_v28, -inf }
 0x2ea   :  { %1033 = vmax.xlane.f32.xlu1 %v1032_v3 }
 0x312   :  { %v935_v23 = vpop.permute.xlu0 %934 }
 0x313   :  { %v999_v62 = vrot.slane %v935_v23, %v2567_v38 }
 0x315   :  { %v1026_v12 = vsel %vm1016_vm5, %v999_v62, %v1025_v16 }
 0x316   :  { %v941_v4 = vpop.permute.xlu0 %940  ;;  %v1027_v56 = vsel %vm1018_vm6, %v1003_v10, %v1026_v12 }
 0x317   :  { %v1007_v42 = vrot.slane %v941_v4, %v2567_v38 }
 0x319   :  { %v1028_v22 = vsel %vm1020_vm7, %v1007_v42, %v1027_v56 }
 0x31a   :  { %v1035_v0 = vsel %vm1031_vm8, %v1028_v22, -inf }
 0x31b   :  { %1036 = vmax.xlane.f32.xlu0 %v1035_v0 }
 0x373   :  { %v2601_v1 = vpop.xlane.xlu1 %1033 }
 0x374   :  { %v1043_v31 = vrot.slane %v2601_v1, %v2210_v43  ;;  %v1047_v17 = vrot.slane %v2601_v1, %v2203_v39  ;;  %v1051_v14 = vrot.slane %v2601_v1, %v2217_v46  ;;  %v1055_v60 = vrot.slane %v2601_v1, %v2222_v48 }
 0x375   :  { %v1059_v47 = vrot.slane %v2601_v1, %v2227_v50  ;;  %v1067_v41 = vrot.slane %v2601_v1, %v2237_v57  ;;  %v1071_v10 = vrot.slane %v2601_v1, %v2477_v32 }
 0x376   :  { %v1120_v27 = vsub.f32 %v2504_v59, %v1043_v31  ;;  %v1121_v61 = vsub.f32 %v2527_v26, %v1047_v17  ;;  %v1122_v28 = vsub.f32 %v2499_v58, %v1051_v14  ;;  %v1123_v20 = vsub.f32 %v2519_v7, %v1055_v60 }
 0x378   :  { %v1136_v34 = vmul.f32 1.442695, %v1120_v27  ;;  %v1138_v8 = vmul.f32 1.442695, %v1121_v61  ;;  %v1140_v6 = vmul.f32 1.442695, %v1122_v28 }
 0x379   :  { %v1142_v18 = vmul.f32 1.442695, %v1123_v20  ;;  %v1932_v28 = vld [vmem:[#allocation4] sm:$0xff]  }
 0x37a   :  { %1868 = vpow2.f32 %v1136_v34 }
 0x37b   :  { %1870 = vpow2.f32 %v1138_v8 }
 0x387   :  { %v2609_v44 = vpop.eup %1868 }
 0x388   :  { %v2611_v15 = vpop.eup %1870  ;;  %1185 = vperm.xlu0 %1785, %v2609_v44  }
 0x389   :  { %1188 = vperm.xlu1 %1784, %v2611_v15  }
 0x3a4   :  { %v1037_v63 = vpop.xlane.xlu0 %1036 }
 0x3a5   :  { %v1075_v59 = vrot.slane %v1037_v63, %v2210_v43  ;;  %v1079_v26 = vrot.slane %v1037_v63, %v2203_v39  ;;  %v1083_v55 = vrot.slane %v1037_v63, %v2217_v46  ;;  %v1087_v5 = vrot.slane %v1037_v63, %v2222_v48 }
 0x3a6   :  { %v1091_v53 = vrot.slane %v1037_v63, %v2227_v50  ;;  %v1095_v52 = vrot.slane %v1037_v63, %v2232_v54  ;;  %v1099_v16 = vrot.slane %v1037_v63, %v2237_v57  ;;  %v1103_v56 = vrot.slane %v1037_v63, %v2477_v32 }
 0x3a7   :  { %v1128_v3 = vsub.f32 %v2512_v30, %v1075_v59  ;;  %v1129_v29 = vsub.f32 %v2521_v21, %v1079_v26  ;;  %v1130_v2 = vsub.f32 %v2496_v49, %v1083_v55  ;;  %v1131_v58 = vsub.f32 %v2509_v24, %v1087_v5 }
 0x3a8   :  { %v1063_v21 = vrot.slane %v2601_v1, %v2232_v54  ;;  %v1124_v49 = vsub.f32 %v2541_v9, %v1059_v47  ;;  %v1132_v23 = vsub.f32 %v2537_v51, %v1091_v53  ;;  %v1133_v12 = vsub.f32 %v2555_v13, %v1095_v52 }
 0x3a9   :  { %v1152_v40 = vmul.f32 1.442695, %v1128_v3  ;;  %v1154_v19 = vmul.f32 1.442695, %v1129_v29  ;;  %v1156_v30 = vmul.f32 1.442695, %v1130_v2  ;;  %v1126_v51 = vsub.f32 %v2533_v36, %v1067_v41 }
 0x3aa   :  { %v1158_v7 = vmul.f32 1.442695, %v1131_v58  ;;  %v1125_v24 = vsub.f32 %v2546_v45, %v1063_v21  ;;  %v1144_v62 = vmul.f32 1.442695, %v1124_v49  ;;  %v1160_v9 = vmul.f32 1.442695, %v1132_v23 }
 0x3ab   :  { %1872 = vpow2.f32 %v1152_v40  ;;  %v1134_v45 = vsub.f32 %v2529_v33, %v1099_v16  ;;  %v1162_v22 = vmul.f32 1.442695, %v1133_v12  ;;  %v1127_v13 = vsub.f32 %v2550_v37, %v1071_v10  ;;  %v2694_v29 = vld [vmem:[%s2850_s7] ss:$0 sm:$0xff] }
 0x3ac   :  { %1874 = vpow2.f32 %v1154_v19  ;;  %v1146_v4 = vmul.f32 1.442695, %v1125_v24  ;;  %v1148_v36 = vmul.f32 1.442695, %v1126_v51  ;;  %v1135_v31 = vsub.f32 %v2559_v25, %v1103_v56  ;;  %v1933_v2 = vld [vmem:[#allocation4 + $0x20] sm:$0xff]  }
 0x3ad   :  { %1876 = vpow2.f32 %v1140_v6  ;;  %v1164_v17 = vmul.f32 1.442695, %v1134_v45  ;;  %v1150_v33 = vmul.f32 1.442695, %v1127_v13  ;;  %v1433_v3 = vunpack.c.l.bf16 %v1932_v28 }
 0x3ae   :  { %1878 = vpow2.f32 %v1156_v30  ;;  %v1166_v37 = vmul.f32 1.442695, %v1135_v31  ;;  %v1434_v5 = vunpack.c.h.bf16 %v1932_v28  ;;  %v1441_v40 = vunpack.c.l.bf16 %v1933_v2 }
 0x3af   :  { %1880 = vpow2.f32 %v1142_v18  ;;  %v1455_v19 = vmul.f32 %v2694_v29, %v1433_v3  ;;  %v1442_v47 = vunpack.c.h.bf16 %v1933_v2 }
 0x3b0   :  { %1882 = vpow2.f32 %v1158_v7  ;;  %v1456_v6 = vmul.f32 %v2694_v29, %v1434_v5  ;;  %v1463_v53 = vmul.f32 %v2694_v29, %v1441_v40  ;;  %v1934_v40 = vld [vmem:[#allocation4 + $0x8] sm:$0xff]  }
 0x3b1   :  { %1884 = vpow2.f32 %v1144_v62  ;;  %v1471_v20 = vsel %vm132_vm0, %v1455_v19, 0.0  ;;  %v1464_v30 = vmul.f32 %v2694_v29, %v1442_v47  ;;  %v1435_v19 = vunpack.c.l.bf16 %v1934_v40 }
 0x3b2   :  { %1886 = vpow2.f32 %v1160_v9  ;;  %v1474_v58 = vsel %vm132_vm0, %v1456_v6, 0.0  ;;  %v1495_v21 = vsel %vm132_vm0, %v1463_v53, 0.0 }
 0x3b3   :  { %1888 = vpow2.f32 %v1146_v4  ;;  %v1498_v49 = vsel %vm132_vm0, %v1464_v30, 0.0 }
 0x3b4   :  { %1890 = vpow2.f32 %v1162_v22 }
 0x3b5   :  { %1892 = vpow2.f32 %v1148_v36 }
 0x3b6   :  { %1894 = vpow2.f32 %v1164_v17 }
 0x3b7   :  { %1896 = vpow2.f32 %v1150_v33 }
 0x3b8   :  { %v2645_v42 = vpop.eup %1872  ;;  %1898 = vpow2.f32 %v1166_v37 }
 0x3b9   :  { %v2649_v0 = vpop.eup %1874  ;;  %1209 = vperm.xlu1 %1784, %v2645_v42  }
 0x3ba   :  { %1212 = vperm.xlu0 %1785, %v2649_v0   ;;  %v2654_v1 = vpop.eup %1876 }
 0x3bb   :  { %v2657_v27 = vpop.eup %1878 }
 0x3bc   :  { %v2661_v61 = vpop.eup %1880 }
 0x3bd   :  { %1191 = vperm.xlu1 %1784, %v2654_v1   ;;  %v2663_v34 = vpop.eup %1882 }
 0x3be   :  { %1215 = vperm.xlu0 %1785, %v2657_v27   ;;  %v2667_v25 = vpop.eup %1884 }
 0x3bf   :  { %v2669_v8 = vpop.eup %1886 }
 0x3c0   :  { %v2673_v14 = vpop.eup %1888 }
 0x3c1   :  { %1194 = vperm.xlu1 %1784, %v2661_v61   ;;  %v2675_v63 = vpop.eup %1890 }
 0x3c2   :  { %1218 = vperm.xlu0 %1785, %v2663_v34   ;;  %v2679_v59 = vpop.eup %1892 }
 0x3c3   :  { %v2681_v26 = vpop.eup %1894 }
 0x3c4   :  { %v2685_v55 = vpop.eup %1896 }
 0x3c5   :  { %1197 = vperm.xlu1 %1784, %v2667_v25   ;;  %v2687_v60 = vpop.eup %1898 }
 0x3c6   :  { %1221 = vperm.xlu0 %1785, %v2669_v8  }
 0x3c9   :  { %1200 = vperm.xlu1 %1784, %v2673_v14  }
 0x3ca   :  { %1224 = vperm.xlu0 %1785, %v2675_v63  }
 0x3cd   :  { %1203 = vperm.xlu1 %1784, %v2679_v59  }
 0x3ce   :  { %1227 = vperm.xlu0 %1785, %v2681_v26  }
 0x3d1   :  { %1206 = vperm.xlu1 %1784, %v2685_v55  }
 0x3d2   :  { %1230 = vperm.xlu0 %1785, %v2687_v60  }
 0x3f1   :  { %1472 = vadd.xlane.f32.xlu0 %v1471_v20 }
 0x3f5   :  { %1475 = vadd.xlane.f32.xlu0 %v1474_v58  ;;  %1496 = vadd.xlane.f32.xlu1 %v1495_v21 }
 0x3f9   :  { %1499 = vadd.xlane.f32.xlu0 %v1498_v49  ;;  %v1935_v49 = vld [vmem:[#allocation4 + $0x28] sm:$0xff]  }
 0x403   :  { %v1186_v52 = vpop.permute.xlu0 %1185 }
 0x404   :  { %v1189_v18 = vpop.permute.xlu1 %1188  ;;  %v1235_v4 = vrot.slane %v1186_v52, %v2567_v38 }
 0x405   :  { %v1239_v51 = vrot.slane %v1189_v18, %v2567_v38  ;;  %v1443_v18 = vunpack.c.l.bf16 %v1935_v49 }
 0x407   :  { %v1296_v28 = vsel %vm1008_vm1, %v1239_v51, %v1235_v4  ;;  %v1436_v4 = vunpack.c.h.bf16 %v1934_v40  ;;  %v1937_v40 = vld [vmem:[#allocation4 + $0x30] sm:$0xff]  }
 0x434   :  { %v1210_v23 = vpop.permute.xlu1 %1209 }
 0x435   :  { %v1213_v7 = vpop.permute.xlu0 %1212  ;;  %v1267_v45 = vrot.slane %v1210_v23, %v2567_v38 }
 0x436   :  { %v1271_v22 = vrot.slane %v1213_v7, %v2567_v38 }
 0x438   :  { %v1192_v41 = vpop.permute.xlu1 %1191  ;;  %v1303_v47 = vsel %vm1008_vm1, %v1271_v22, %v1267_v45  ;;  %v1465_v22 = vmul.f32 %v2694_v29, %v1443_v18  ;;  %v1938_v18 = vld [vmem:[#allocation4 + $0x18] sm:$0xff]  }
 0x439   :  { %v1216_v24 = vpop.permute.xlu0 %1215  ;;  %v1243_v13 = vrot.slane %v1192_v41, %v2567_v38 }
 0x43a   :  { %v1275_v36 = vrot.slane %v1216_v24, %v2567_v38 }
 0x43b   :  { %v1297_v20 = vsel %vm1010_vm2, %v1243_v13, %v1296_v28  ;;  %v1444_v13 = vunpack.c.h.bf16 %v1935_v49  ;;  %v1936_v28 = vld [vmem:[#allocation4 + $0x10] sm:$0xff]  }
 0x43c   :  { %v1195_v62 = vpop.permute.xlu1 %1194  ;;  %v1304_v58 = vsel %vm1010_vm2, %v1275_v36, %v1303_v47 }
 0x43d   :  { %v1219_v16 = vpop.permute.xlu0 %1218  ;;  %v1247_v31 = vrot.slane %v1195_v62, %v2567_v38 }
 0x43e   :  { %v1279_v17 = vrot.slane %v1219_v16, %v2567_v38 }
 0x43f   :  { %v1298_v30 = vsel %vm1012_vm4, %v1247_v31, %v1297_v20 }
 0x440   :  { %v1198_v12 = vpop.permute.xlu1 %1197  ;;  %v1305_v52 = vsel %vm1012_vm4, %v1279_v17, %v1304_v58 }
 0x441   :  { %v1222_v9 = vpop.permute.xlu0 %1221  ;;  %v1251_v33 = vrot.slane %v1198_v12, %v2567_v38  ;;  %v1457_v12 = vmul.f32 %v2694_v29, %v1435_v19  ;;  %v1445_v19 = vunpack.c.l.bf16 %v1937_v40 }
 0x442   :  { %v1283_v3 = vrot.slane %v1222_v9, %v2567_v38 }
 0x443   :  { %v1299_v23 = vsel %vm1014_vm3, %v1251_v33, %v1298_v30  ;;  %v1477_v33 = vsel %vm132_vm0, %v1457_v12, 0.0  ;;  %v1467_v58 = vmul.f32 %v2694_v29, %v1445_v19  ;;  %v1446_v30 = vunpack.c.h.bf16 %v1937_v40 }
 0x444   :  { %v1201_v10 = vpop.permute.xlu1 %1200  ;;  %v1306_v41 = vsel %vm1014_vm3, %v1283_v3, %v1305_v52  ;;  %v1437_v3 = vunpack.c.l.bf16 %v1936_v28  ;;  %v1439_v52 = vunpack.c.l.bf16 %v1938_v18  ;;  %v1440_v12 = vunpack.c.h.bf16 %v1938_v18 }
 0x445   :  { %v1225_v56 = vpop.permute.xlu0 %1224  ;;  %v1255_v5 = vrot.slane %v1201_v10, %v2567_v38 }
 0x446   :  { %v1287_v6 = vrot.slane %v1225_v56, %v2567_v38  ;;  %v1459_v20 = vmul.f32 %v2694_v29, %v1437_v3 }
 0x447   :  { %v1300_v24 = vsel %vm1016_vm5, %v1255_v5, %v1299_v23  ;;  %v1501_v5 = vsel %vm132_vm0, %v1465_v22, 0.0  ;;  %v1507_v23 = vsel %vm132_vm0, %v1467_v58, 0.0 }
 0x448   :  { %v1204_v37 = vpop.permute.xlu1 %1203  ;;  %v1307_v9 = vsel %vm1016_vm5, %v1287_v6, %v1306_v41  ;;  %v1438_v6 = vunpack.c.h.bf16 %v1936_v28  ;;  %v1939_v41 = vld [vmem:[#allocation4 + $0x38] sm:$0xff]  }
 0x449   :  { %v1228_v2 = vpop.permute.xlu0 %1227  ;;  %v1259_v53 = vrot.slane %v1204_v37, %v2567_v38  ;;  %v1458_v37 = vmul.f32 %v2694_v29, %v1436_v4 }
 0x44a   :  { %v1291_v21 = vrot.slane %v1228_v2, %v2567_v38  ;;  %v1466_v2 = vmul.f32 %v2694_v29, %v1444_v13  ;;  %v1460_v49 = vmul.f32 %v2694_v29, %v1438_v6 }
 0x44b   :  { %v1301_v51 = vsel %vm1018_vm6, %v1259_v53, %v1300_v24  ;;  %v1480_v47 = vsel %vm132_vm0, %v1458_v37, 0.0  ;;  %v1447_v24 = vunpack.c.l.bf16 %v1939_v41 }
 0x44c   :  { %v1207_v7 = vpop.permute.xlu1 %1206  ;;  %v1308_v45 = vsel %vm1018_vm6, %v1291_v21, %v1307_v9  ;;  %v1504_v53 = vsel %vm132_vm0, %v1466_v2, 0.0  ;;  %v1483_v21 = vsel %vm132_vm0, %v1459_v20, 0.0 }
 0x44d   :  { %v1263_v62 = vrot.slane %v1207_v7, %v2567_v38  ;;  %v1231_v16 = vpop.permute.xlu0 %1230  ;;  %v1468_v7 = vmul.f32 %v2694_v29, %v1446_v30 }
 0x44e   :  { %v1295_v10 = vrot.slane %v1231_v16, %v2567_v38  ;;  %v1461_v16 = vmul.f32 %v2694_v29, %v1439_v52 }
 0x44f   :  { %v1302_v56 = vsel %vm1020_vm7, %v1263_v62, %v1301_v51  ;;  %v1486_v62 = vsel %vm132_vm0, %v1460_v49, 0.0  ;;  %v1510_v9 = vsel %vm132_vm0, %v1468_v7, 0.0  ;;  %v1448_v51 = vunpack.c.h.bf16 %v1939_v41 }
 0x450   :  { %v1312_v36 = vsel %vm1031_vm8, %v1302_v56, 0.0  ;;  %v1309_v31 = vsel %vm1020_vm7, %v1295_v10, %v1308_v45  ;;  %v1469_v10 = vmul.f32 %v2694_v29, %v1447_v24  ;;  %v1489_v4 = vsel %vm132_vm0, %v1461_v16, 0.0 }
 0x451   :  { %1313 = vadd.xlane.f32.xlu1 %v1312_v36  ;;  %v1315_v17 = vsel %vm1031_vm8, %v1309_v31, 0.0  ;;  %v1462_v56 = vmul.f32 %v2694_v29, %v1440_v12  ;;  %v1470_v22 = vmul.f32 %v2694_v29, %v1448_v51 }
 0x452   :  { %1316 = vadd.xlane.f32.xlu0 %v1315_v17  ;;  %v1513_v45 = vsel %vm132_vm0, %v1469_v10, 0.0 }
 0x453   :  { %v1492_v13 = vsel %vm132_vm0, %v1462_v56, 0.0  ;;  %v1516_v36 = vsel %vm132_vm0, %v1470_v22, 0.0 }
 0x455   :  { %1478 = vadd.xlane.f32.xlu1 %v1477_v33 }
 0x456   :  { %1502 = vadd.xlane.f32.xlu0 %v1501_v5 }
 0x459   :  { %1481 = vadd.xlane.f32.xlu1 %v1480_v47 }
 0x45a   :  { %1505 = vadd.xlane.f32.xlu0 %v1504_v53 }
 0x45d   :  { %1484 = vadd.xlane.f32.xlu1 %v1483_v21 }
 0x45e   :  { %1508 = vadd.xlane.f32.xlu0 %v1507_v23 }
 0x461   :  { %1487 = vadd.xlane.f32.xlu1 %v1486_v62 }
 0x462   :  { %1511 = vadd.xlane.f32.xlu0 %v1510_v9 }
 0x465   :  { %1490 = vadd.xlane.f32.xlu1 %v1489_v4 }
 0x466   :  { %1514 = vadd.xlane.f32.xlu0 %v1513_v45 }
 0x469   :  { %1493 = vadd.xlane.f32.xlu1 %v1492_v13 }
 0x46a   :  { %1517 = vadd.xlane.f32.xlu0 %v1516_v36 }
 0x47a   :  { %v1473_v31 = vpop.xlane.xlu0 %1472 }
 0x47e   :  { %v1476_v17 = vpop.xlane.xlu0 %1475  ;;  %v1497_v33 = vpop.xlane.xlu1 %1496 }
 0x482   :  { %v1500_v37 = vpop.xlane.xlu0 %1499 }
 0x4da   :  { %v2760_v28 = vpop.xlane.xlu1 %1313 }
 0x4db   :  { %v1323_v3 = vrot.slane %v2760_v28, %v2210_v43  ;;  %v1327_v29 = vrot.slane %v2760_v28, %v2203_v39  ;;  %v1317_v5 = vpop.xlane.xlu0 %1316  ;;  %v1331_v20 = vrot.slane %v2760_v28, %v2217_v46  ;;  %v1339_v58 = vrot.slane %v2760_v28, %v2227_v50 }
 0x4dc   :  { %v1355_v2 = vrot.slane %v1317_v5, %v2210_v43  ;;  %v1359_v40 = vrot.slane %v1317_v5, %v2203_v39  ;;  %v1363_v19 = vrot.slane %v1317_v5, %v2217_v46  ;;  %v1367_v47 = vrot.slane %v1317_v5, %v2222_v48 }
 0x4dd   :  { %1900 = vrcp.f32 %v1323_v3  ;;  %v1371_v6 = vrot.slane %v1317_v5, %v2227_v50  ;;  %v1335_v43 = vrot.slane %v2760_v28, %v2222_v48  ;;  %v1375_v39 = vrot.slane %v1317_v5, %v2232_v54 }
 0x4de   :  { %1902 = vrcp.f32 %v1327_v29  ;;  %v1479_v52 = vpop.xlane.xlu1 %1478  ;;  %v1379_v23 = vrot.slane %v1317_v5, %v2237_v57  ;;  %v1343_v48 = vrot.slane %v2760_v28, %v2232_v54  ;;  %v1347_v22 = vrot.slane %v2760_v28, %v2237_v57 }
 0x4df   :  { %1904 = vrcp.f32 %v1355_v2  ;;  %v1503_v53 = vpop.xlane.xlu0 %1502 }
 0x4e0   :  { %1906 = vrcp.f32 %v1359_v40 }
 0x4e1   :  { %1908 = vrcp.f32 %v1363_v19 }
 0x4e2   :  { %1910 = vrcp.f32 %v1367_v47  ;;  %v1482_v56 = vpop.xlane.xlu1 %1481 }
 0x4e3   :  { %1912 = vrcp.f32 %v1331_v20  ;;  %v1506_v46 = vpop.xlane.xlu0 %1505 }
 0x4e4   :  { %1914 = vrcp.f32 %v1371_v6 }
 0x4e5   :  { %1916 = vrcp.f32 %v1335_v43 }
 0x4e6   :  { %1918 = vrcp.f32 %v1375_v39  ;;  %v1485_v3 = vpop.xlane.xlu1 %1484 }
 0x4e7   :  { %1920 = vrcp.f32 %v1339_v58  ;;  %v1509_v10 = vpop.xlane.xlu0 %1508 }
 0x4e8   :  { %1922 = vrcp.f32 %v1379_v23 }
 0x4e9   :  { %1924 = vrcp.f32 %v1343_v48 }
 0x4ea   :  { %v1901_v30 = vpop.eup %1900 }
 0x4eb   :  { %v1903_v21 = vpop.eup %1902  ;;  %v1401_v49 = vmul.f32 %v1901_v30, %v2609_v44  ;;  %v1383_v44 = vrot.slane %v1317_v5, %v2477_v32 }
 0x4ec   :  { %v1905_v18 = vpop.eup %1904  ;;  %v1403_v7 = vmul.f32 %v1903_v21, %v2611_v15 }
 0x4ed   :  { %v1519_v41 = vmul.f32 %v1473_v31, %v1401_v49  ;;  %v1417_v24 = vmul.f32 %v1905_v18, %v2645_v42  ;;  %v1907_v50 = vpop.eup %1906  ;;  %1926 = vrcp.f32 %v1383_v44 }
 0x4ee   :  { %v1520_v62 = vmul.f32 %v1476_v17, %v1403_v7  ;;  %v1909_v16 = vpop.eup %1908  ;;  %v1419_v51 = vmul.f32 %v1907_v50, %v2649_v0  ;;  %1928 = vrcp.f32 %v1347_v22 }
 0x4ef   :  { %1552 = vperm.xlu1 %1784, %v1519_v41   ;;  %v1421_v12 = vmul.f32 %v1909_v16, %v2657_v27  ;;  %v1911_v9 = vpop.eup %1910  ;;  %v1527_v15 = vmul.f32 %v1497_v33, %v1417_v24  ;;  %v1512_v33 = vpop.xlane.xlu0 %1511 }
 0x4f0   :  { %1555 = vperm.xlu0 %1785, %v1520_v62   ;;  %v1913_v54 = vpop.eup %1912  ;;  %v1423_v42 = vmul.f32 %v1911_v9, %v2663_v34  ;;  %v1528_v13 = vmul.f32 %v1500_v37, %v1419_v51  ;;  %v1351_v34 = vrot.slane %v2760_v28, %v2477_v32  ;;  %v1488_v32 = vpop.xlane.xlu1 %1487 }
 0x4f1   :  { %v1529_v4 = vmul.f32 %v1503_v53, %v1421_v12  ;;  %v1915_v45 = vpop.eup %1914  ;;  %v1405_v27 = vmul.f32 %v1913_v54, %v2654_v1 }
 0x4f2   :  { %v1917_v36 = vpop.eup %1916  ;;  %v1530_v31 = vmul.f32 %v1506_v46, %v1423_v42  ;;  %v1425_v17 = vmul.f32 %v1915_v45, %v2669_v8  ;;  %1930 = vrcp.f32 %v1351_v34 }
 0x4f3   :  { %1576 = vperm.xlu1 %1784, %v1527_v15   ;;  %v1919_v0 = vpop.eup %1918  ;;  %v1521_v57 = vmul.f32 %v1479_v52, %v1405_v27  ;;  %v1407_v29 = vmul.f32 %v1917_v36, %v2661_v61  ;;  %v1515_v19 = vpop.xlane.xlu0 %1514 }
 0x4f4   :  { %1582 = vperm.xlu0 %1785, %v1529_v4   ;;  %v1921_v5 = vpop.eup %1920  ;;  %v1531_v2 = vmul.f32 %v1509_v10, %v1425_v17  ;;  %v1427_v1 = vmul.f32 %v1919_v0, %v2675_v63  ;;  %v1491_v58 = vpop.xlane.xlu1 %1490 }
 0x4f5   :  { %v1923_v8 = vpop.eup %1922  ;;  %v1522_v37 = vmul.f32 %v1482_v56, %v1407_v29  ;;  %v1409_v40 = vmul.f32 %v1921_v5, %v2667_v25 }
 0x4f6   :  { %v1925_v47 = vpop.eup %1924  ;;  %v1532_v28 = vmul.f32 %v1512_v33, %v1427_v1  ;;  %v1429_v20 = vmul.f32 %v1923_v8, %v2681_v26 }
 0x4f7   :  { %1579 = vperm.xlu1 %1784, %v1528_v13   ;;  %v1523_v6 = vmul.f32 %v1485_v3, %v1409_v40  ;;  %v1411_v53 = vmul.f32 %v1925_v47, %v2673_v14  ;;  %v1518_v43 = vpop.xlane.xlu0 %1517 }
 0x4f8   :  { %1585 = vperm.xlu0 %1785, %v1530_v31   ;;  %v1533_v63 = vmul.f32 %v1515_v19, %v1429_v20  ;;  %v1494_v18 = vpop.xlane.xlu1 %1493 }
 0x4f9   :  { %v1524_v25 = vmul.f32 %v1488_v32, %v1411_v53 }
 0x4fa   :  { %v1927_v61 = vpop.eup %1926 }
 0x4fb   :  { %1558 = vperm.xlu1 %1784, %v1521_v57   ;;  %v1929_v39 = vpop.eup %1928  ;;  %v1431_v30 = vmul.f32 %v1927_v61, %v2687_v60 }
 0x4fc   :  { %1588 = vperm.xlu0 %1785, %v1531_v2   ;;  %v1413_v46 = vmul.f32 %v1929_v39, %v2679_v59 }
 0x4fd   :  { %v1534_v21 = vmul.f32 %v1518_v43, %v1431_v30  ;;  %v1686_v43 = vstv %s2852_s9 }
 0x4fe   :  { %v1525_v26 = vmul.f32 %v1491_v58, %v1413_v46 }
 0x4ff   :  { %1561 = vperm.xlu1 %1784, %v1522_v37   ;;  %v1931_v49 = vpop.eup %1930 }
 0x500   :  { %1591 = vperm.xlu0 %1785, %v1532_v28   ;;  %v1415_v52 = vmul.f32 %v1931_v49, %v2685_v55 }
 0x502   :  { %v1526_v14 = vmul.f32 %v1494_v18, %v1415_v52 }
 0x503   :  { %1564 = vperm.xlu1 %1784, %v1523_v6  }
 0x504   :  { %1594 = vperm.xlu0 %1785, %v1533_v63   ;;  %v1695_v63 = vadd.s32 4294967288, %v2563_v11 }
 0x506   :  { %v1698_v58 = vsub.s32 %v1695_v63, %v2195_v35 }
 0x507   :  { %1567 = vperm.xlu1 %1784, %v1524_v25  }
 0x508   :  { %1597 = vperm.xlu0 %1785, %v1534_v21  }
 0x50b   :  { %1570 = vperm.xlu1 %1784, %v1525_v26  }
 0x50f   :  { %1573 = vperm.xlu1 %1784, %v1526_v14  }
 0x56a   :  { %v1553_v23 = vpop.permute.xlu1 %1552 }
 0x56b   :  { %v1556_v7 = vpop.permute.xlu0 %1555  ;;  %v1602_v27 = vrot.slane %v1553_v23, %v2567_v38 }
 0x56c   :  { %v1606_v13 = vrot.slane %v1556_v7, %v2567_v38 }
 0x56e   :  { %v1577_v48 = vpop.permute.xlu1 %1576  ;;  %v1663_v2 = vsel %vm1008_vm1, %v1606_v13, %v1602_v27 }
 0x56f   :  { %v1583_v41 = vpop.permute.xlu0 %1582  ;;  %v1634_v16 = vrot.slane %v1577_v48, %v2567_v38 }
 0x570   :  { %v1642_v55 = vrot.slane %v1583_v41, %v2567_v38 }
 0x572   :  { %v1580_v60 = vpop.permute.xlu1 %1579 }
 0x573   :  { %v1586_v24 = vpop.permute.xlu0 %1585  ;;  %v1638_v50 = vrot.slane %v1580_v60, %v2567_v38 }
 0x574   :  { %v1646_v15 = vrot.slane %v1586_v24, %v2567_v38 }
 0x575   :  { %v1670_v12 = vsel %vm1008_vm1, %v1638_v50, %v1634_v16 }
 0x576   :  { %v1559_v62 = vpop.permute.xlu1 %1558  ;;  %v1671_v10 = vsel %vm1010_vm2, %v1642_v55, %v1670_v12 }
 0x577   :  { %v1589_v59 = vpop.permute.xlu0 %1588  ;;  %v1672_v56 = vsel %vm1012_vm4, %v1646_v15, %v1671_v10  ;;  %v1610_v17 = vrot.slane %v1559_v62, %v2567_v38 }
 0x578   :  { %v1650_v54 = vrot.slane %v1589_v59, %v2567_v38 }
 0x579   :  { %v1664_v37 = vsel %vm1010_vm2, %v1610_v17, %v1663_v2 }
 0x57a   :  { %v1562_v44 = vpop.permute.xlu1 %1561  ;;  %v1673_v36 = vsel %vm1014_vm3, %v1650_v54, %v1672_v56 }
 0x57b   :  { %v1592_v9 = vpop.permute.xlu0 %1591  ;;  %v1614_v34 = vrot.slane %v1562_v44, %v2567_v38 }
 0x57c   :  { %v1654_v42 = vrot.slane %v1592_v9, %v2567_v38 }
 0x57d   :  { %v1665_v19 = vsel %vm1012_vm4, %v1614_v34, %v1664_v37 }
 0x57e   :  { %v1565_v51 = vpop.permute.xlu1 %1564  ;;  %v1674_v0 = vsel %vm1016_vm5, %v1654_v42, %v1673_v36 }
 0x57f   :  { %v1595_v4 = vpop.permute.xlu0 %1594  ;;  %v1618_v57 = vrot.slane %v1565_v51, %v2567_v38 }
 0x580   :  { %v1658_v45 = vrot.slane %v1595_v4, %v2567_v38 }
 0x581   :  { %v1666_v47 = vsel %vm1014_vm3, %v1618_v57, %v1665_v19 }
 0x582   :  { %v1568_v22 = vpop.permute.xlu1 %1567  ;;  %v1675_v3 = vsel %vm1018_vm6, %v1658_v45, %v1674_v0 }
 0x583   :  { %v1598_v31 = vpop.permute.xlu0 %1597  ;;  %v1622_v1 = vrot.slane %v1568_v22, %v2567_v38 }
 0x584   :  { %v1662_v33 = vrot.slane %v1598_v31, %v2567_v38 }
 0x585   :  { %v1667_v28 = vsel %vm1016_vm5, %v1622_v1, %v1666_v47 }
 0x586   :  { %v1571_v29 = vpop.permute.xlu1 %1570  ;;  %v1676_v5 = vsel %vm1020_vm7, %v1662_v33, %v1675_v3 }
 0x587   :  { %v1682_v8 = vsel %vm1031_vm8, %v1676_v5, 0.0  ;;  %v1626_v40 = vrot.slane %v1571_v29, %v2567_v38 }
 0x588   :  { %1683 = vadd.xlane.f32.xlu0 %v1682_v8 }
 0x589   :  { %v1668_v61 = vsel %vm1018_vm6, %v1626_v40, %v1667_v28 }
 0x58a   :  { %v1574_v32 = vpop.permute.xlu1 %1573 }
 0x58b   :  { %v1630_v20 = vrot.slane %v1574_v32, %v2567_v38 }
 0x58d   :  { %v1669_v6 = vsel %vm1020_vm7, %v1630_v20, %v1668_v61 }
 0x58e   :  { %v1679_v53 = vsel %vm1031_vm8, %v1669_v6, 0.0 }
 0x58f   :  { %1680 = vadd.xlane.f32.xlu1 %v1679_v53 }
 0x611   :  { %v1684_v39 = vpop.xlane.xlu0 %1683 }
 0x612   :  { %v1688_v30 = vadd.f32 %v1686_v43, %v1684_v39 }
 0x614   :  { %v1699_v46 = vrot.slane %v1688_v30, %v1698_v58 }
 0x618   :  { %v1681_v25 = vpop.xlane.xlu1 %1680 }
 0x619   :  { %v1687_v21 = vadd.f32 %v1686_v43, %v1681_v25 }
 0x61b   :  { %v1694_v49 = vrot.slane %v1687_v21, %v2567_v38 }
 0x61d   :  { %v1701_v26 = vsel %vm1700_vm9, %v1699_v46, %v1694_v49 }
 0x61e   :  { %1704 = vst.msk [vmem:[#allocation7] sm:$0x1] %vm1703_vm10, %v1701_v26 }
 0x61f   :  { %1971 = shalt.err (!%p1968_p9)
}
 0x620   :  { %1714 = dma.vmem_to_hbm [thread:$0]  %s1712_s14, 16, %s2853_s10, [#allocation6]  }
 0x621   :  { %1982 = dma.done.wait [#allocation6], 16  }
 0x622   :  { %1983 = vsyncadd [#allocation6], 4294967280 }
 0x623   :  { %1718 = vsyncpa [#allocation5], 1 }
 0x624   :  { %1719 = vsyncpa [#allocation6], 1 }

</bundles_post_ra>
